<compile_context>
chip_gen: v5e
topology: v5e:2x2
jax: 0.10.0
libtpu: 0.0.40
codegen_flags: <defaults>
</compile_context>

<pallas_src>
import functools

import jax
import jax.numpy as jnp
from jax import lax
from jax.experimental import pallas as pl
from jax.experimental.pallas import tpu as pltpu


# ----------------------------- Pass 1: reduce ------------------------------
def _skconv_reduce_kernel(xb_ref, bn_s_ref, bn_b_ref, sum_ref, *, hw_true, tile_hw):
    # xb_ref : (1, branch, C, T)   tile of stacked X[1:]
    # bn_*   : (branch, C, 1)      folded BN scale / bias (f32)
    # sum_ref: (1, C, 1)           running spatial sum of fea_U for this batch elem
    t = pl.program_id(1)

    @pl.when(t == 0)
    def _():
        sum_ref[...] = jnp.zeros_like(sum_ref)

    xb = xb_ref[0].astype(jnp.float32)                             # (branch, C, T)
    feas = jnp.maximum(xb * bn_s_ref[...] + bn_b_ref[...], 0.0)    # BN(eval)+ReLU
    fea_U = jnp.sum(feas, axis=0)                                  # (C, T)

    if hw_true is not None:
        # Mask lanes that are padding (ReLU(0*scale+bias) != 0 in general).
        c_dim, t_dim = fea_U.shape
        lane = lax.broadcasted_iota(jnp.int32, (c_dim, t_dim), 1) + t * tile_hw
        fea_U = jnp.where(lane < hw_true, fea_U, 0.0)

    sum_ref[...] += jnp.sum(fea_U, axis=-1, keepdims=True)[None]   # (1, C, 1)


# ----------------------------- Pass 2: apply -------------------------------
def _skconv_apply_kernel(x0_ref, xb_ref, bn_s_ref, bn_b_ref, att_ref, out_ref):
    # x0_ref : (1, C, T)            residual X[0] tile
    # xb_ref : (1, branch, C, T)    tile of stacked X[1:]
    # bn_*   : (branch, C, 1)
    # att_ref: (1, branch, C, 1)    softmaxed attention for this batch element
    # out_ref: (1, C, T)
    xb = xb_ref[0].astype(jnp.float32)
    # Recompute BN+ReLU instead of keeping `feas` live between passes:
    # extra VALU work is free in an HBM-bound kernel and halves live VMEM.
    feas = jnp.maximum(xb * bn_s_ref[...] + bn_b_ref[...], 0.0)    # (branch, C, T)
    fea_v = jnp.sum(feas * att_ref[0], axis=0) + x0_ref[0].astype(jnp.float32)
    out_ref[0] = fea_v.astype(out_ref.dtype)


# ------------------------------- Wrapper -----------------------------------
def _choose_hw_tile(hw_pad_to_128, c, branch, itemsize):
    # Per-HW-lane VMEM bytes per apply-pass grid step:
    #   double-buffered I/O ((branch+2) slabs) + conservative f32 temporaries.
    per_lane = (branch + 2) * c * (2 * itemsize + 4)
    tile = ((24 << 20) // per_lane) // 128 * 128
    tile = max(128, min(tile, 8192, hw_pad_to_128))
    return int(tile)


def skconv_pallas(x0, xb, bn_scale, bn_bias, fc_w, fc_b, fcs_w, fcs_b):
    """SKConv forward.

    x0       : (B, C, HW)             X[0] (residual), f32 or bf16
    xb       : (B, branch, C, HW)     stacked X[1:], f32 or bf16
    bn_scale : (branch, C, 1)         gamma / sqrt(var+eps)
    bn_bias  : (branch, C, 1)         beta - mean * scale
    fc_w     : (d, C),   fc_b : (d,)
    fcs_w    : (branch, C, d), fcs_b : (branch, C)
    """
    B, C, HW = x0.shape
    branch = xb.shape[1]
    itemsize = jnp.dtype(x0.dtype).itemsize

    hw_128 = pl.cdiv(HW, 128) * 128
    tile = _choose_hw_tile(hw_128, C, branch, itemsize)
    n_tiles = pl.cdiv(hw_128, tile)
    hw_pad = n_tiles * tile

    if hw_pad != HW:
        pad = hw_pad - HW
        x0_p = jnp.pad(x0, ((0, 0), (0, 0), (0, pad)))
        xb_p = jnp.pad(xb, ((0, 0), (0, 0), (0, 0), (0, pad)))
        hw_true = HW                        # mask padded lanes in the reduce pass
    else:
        x0_p, xb_p, hw_true = x0, xb, None

    # Explicit VMEM budget: 2x-buffered I/O tiles + f32 temporaries + slack.
    vmem_limit = int(min(max((branch + 2) * C * tile * (2 * itemsize + 4) + (4 << 20),
                             16 << 20), 48 << 20))

    bn_scale_f = bn_scale.astype(jnp.float32)
    bn_bias_f = bn_bias.astype(jnp.float32)

    # ---- Pass 1: per-batch spatial sum of fea_U = sum_i ReLU(BN_i(X[i+1])) ----
    fea_sum = pl.pallas_call(
        functools.partial(_skconv_reduce_kernel, hw_true=hw_true, tile_hw=tile),
        out_shape=jax.ShapeDtypeStruct((B, C, 1), jnp.float32),
        grid_spec=pltpu.PrefetchScalarGridSpec(
            num_scalar_prefetch=0,
            grid=(B, n_tiles),
            in_specs=[
                pl.BlockSpec((1, branch, C, tile), lambda b, t: (b, 0, 0, t)),
                pl.BlockSpec((branch, C, 1), lambda b, t: (0, 0, 0)),
                pl.BlockSpec((branch, C, 1), lambda b, t: (0, 0, 0)),
            ],
            out_specs=pl.BlockSpec((1, C, 1), lambda b, t: (b, 0, 0)),
        ),
        compiler_params=pltpu.CompilerParams(
            dimension_semantics=("parallel", "arbitrary"),
            vmem_limit_bytes=vmem_limit),
    )(xb_p, bn_scale_f, bn_bias_f)

    # ---- Tiny squeeze-excite + softmax in plain JAX (lane-dense matmuls) ----
    fea_s = fea_sum[:, :, 0] / jnp.float32(HW)                                # (B, C)
    fea_z = fea_s @ fc_w.astype(jnp.float32).T + fc_b.astype(jnp.float32)     # (B, d)
    att = jnp.einsum('bd,icd->bic', fea_z, fcs_w.astype(jnp.float32),
                     preferred_element_type=jnp.float32)
    att = att + fcs_b.astype(jnp.float32)[None]                               # (B, branch, C)
    att = jax.nn.softmax(att, axis=1)[..., None]                              # (B, branch, C, 1)

    # ---- Pass 2: recompute BN+ReLU, apply attention, add residual X[0] ----
    out_p = pl.pallas_call(
        _skconv_apply_kernel,
        out_shape=jax.ShapeDtypeStruct((B, C, hw_pad), x0.dtype),
        grid_spec=pltpu.PrefetchScalarGridSpec(
            num_scalar_prefetch=0,
            grid=(B, n_tiles),
            in_specs=[
                pl.BlockSpec((1, C, tile), lambda b, t: (b, 0, t)),
                pl.BlockSpec((1, branch, C, tile), lambda b, t: (b, 0, 0, t)),
                pl.BlockSpec((branch, C, 1), lambda b, t: (0, 0, 0)),
                pl.BlockSpec((branch, C, 1), lambda b, t: (0, 0, 0)),
                pl.BlockSpec((1, branch, C, 1), lambda b, t: (b, 0, 0, 0)),
            ],
            out_specs=pl.BlockSpec((1, C, tile), lambda b, t: (b, 0, t)),
        ),
        compiler_params=pltpu.CompilerParams(
            dimension_semantics=("parallel", "parallel"),
            vmem_limit_bytes=vmem_limit),
    )(x0_p, xb_p, bn_scale_f, bn_bias_f, att)

    if hw_pad != HW:
        out_p = out_p[:, :, :HW]
    return out_p


# ------------------------------ Reference ----------------------------------
def skconv_ref(x0, xb, bn_scale, bn_bias, fc_w, fc_b, fcs_w, fcs_b):
    """Pure-JAX reference (same flattened layout), f32 math."""
    x0 = x0.astype(jnp.float32)
    xb = xb.astype(jnp.float32)
    feas = jnp.maximum(xb * bn_scale[None] + bn_bias[None], 0.0)    # (B,br,C,HW)
    fea_U = feas.sum(axis=1)                                        # (B,C,HW)
    fea_s = fea_U.mean(axis=-1)                                     # (B,C)
    fea_z = fea_s @ fc_w.T + fc_b                                   # (B,d)
    att = jnp.einsum('bd,icd->bic', fea_z, fcs_w) + fcs_b[None]     # (B,br,C)
    att = jax.nn.softmax(att, axis=1)
    return (feas * att[..., None]).sum(axis=1) + x0


if __name__ == "__main__":
    def make_inputs(key, B, features, H, W, M, r, L, dtype=jnp.float32):
        branch = M - 1
        d = max(features // r, L)
        HW = H * W
        keys = jax.random.split(key, 12)
        x_list = [jax.random.normal(keys[i], (B, features, HW), jnp.float32)
                  for i in range(M)]
        x0 = x_list[0].astype(dtype)
        xb = jnp.stack(x_list[1:], axis=1).astype(dtype)            # (B, branch, C, HW)
        eps = 1e-5
        gamma = 1.0 + 0.1 * jax.random.normal(keys[3], (branch, features), jnp.float32)
        beta = 0.1 * jax.random.normal(keys[4], (branch, features), jnp.float32)
        run_mean = 0.1 * jax.random.normal(keys[5], (branch, features), jnp.float32)
        run_var = jnp.abs(1.0 + 0.1 * jax.random.normal(keys[6], (branch, features),
                                                        jnp.float32))
        inv_std = gamma / jnp.sqrt(run_var + eps)
        bn_scale = inv_std[..., None]                               # (branch, C, 1)
        bn_bias = (beta - run_mean * inv_std)[..., None]            # (branch, C, 1)
        fc_w = 0.05 * jax.random.normal(keys[7], (d, features), jnp.float32)
        fc_b = 0.05 * jax.random.normal(keys[8], (d,), jnp.float32)
        fcs_w = 0.05 * jax.random.normal(keys[9], (branch, features, d), jnp.float32)
        fcs_b = 0.05 * jax.random.normal(keys[10], (branch, features), jnp.float32)
        return (x0, xb, bn_scale, bn_bias, fc_w, fc_b, fcs_w, fcs_b)

    skconv_jit = jax.jit(skconv_pallas)

    # Config 1: features=64, M=3, r=16, L=32 -> d=32; H=W=16 (HW multiple of 128).
    args1 = make_inputs(jax.random.PRNGKey(0), 2, 64, 16, 16, 3, 16, 32)
    out1 = jax.block_until_ready(skconv_jit(*args1))
    ref1 = skconv_ref(*args1)
    assert out1.shape == ref1.shape
    assert jnp.allclose(out1, ref1, atol=1e-4, rtol=1e-4), "config1 mismatch vs reference"

    # Config 2: H=W=10 -> HW=100 (not a multiple of 128): exercises padding + masked mean.
    args2 = make_inputs(jax.random.PRNGKey(1), 3, 64, 10, 10, 3, 16, 32)
    out2 = jax.block_until_ready(skconv_jit(*args2))
    ref2 = skconv_ref(*args2)
    assert jnp.allclose(out2, ref2, atol=1e-4, rtol=1e-4), "config2 mismatch vs reference"

    # Config 3: bf16 feature maps (halves HBM traffic on v6e/v7x); in-kernel math stays f32.
    args3 = make_inputs(jax.random.PRNGKey(2), 2, 64, 16, 16, 3, 16, 32,
                        dtype=jnp.bfloat16)
    out3 = jax.block_until_ready(skconv_jit(*args3))
    ref3 = skconv_ref(*args3)
    assert out3.dtype == jnp.bfloat16
    assert jnp.allclose(out3.astype(jnp.float32), ref3, atol=1e-1, rtol=2e-2), \
        "config3 (bf16 I/O) mismatch vs reference"

    print("KERNEL_OK")
</pallas_src>

<mosaic_0001>
module attributes {stable_mosaic.version = 11 : i64} {
  func.func @_skconv_reduce_kernel(%arg0: i32, %arg1: i32, %arg2: memref<1x2x64x256xf32, #tpu.memory_space<vmem>>, %arg3: memref<2x64x1xf32, #tpu.memory_space<vmem>>, %arg4: memref<2x64x1xf32, #tpu.memory_space<vmem>>, %arg5: memref<1x64x1xf32, #tpu.memory_space<vmem>>) attributes {dimension_semantics = [#tpu.dimension_semantics<parallel>, #tpu.dimension_semantics<arbitrary>], iteration_bounds = array<i64: 2, 1>, scalar_prefetch = 0 : i64, scratch_operands = 0 : i64, tpu.core_type = #tpu.core_type<tc>, window_params = [{transform_indices = @transform_0, window_bounds = array<i64: 1, 2, 64, 256>}, {pipeline_mode = #tpu.pipeline_mode<synchronous>, transform_indices = @transform_1, window_bounds = array<i64: 2, 64, 1>}, {pipeline_mode = #tpu.pipeline_mode<synchronous>, transform_indices = @transform_2, window_bounds = array<i64: 2, 64, 1>}, {transform_indices = @transform_3, window_bounds = array<i64: 1, 64, 1>}]} {
    %c0_i32 = arith.constant 0 : i32
    %0 = arith.cmpi eq, %arg1, %c0_i32 : i32
    %1 = arith.extui %0 : i1 to i32
    %c0_i32_0 = arith.constant 0 : i32
    %2 = arith.cmpi ne, %1, %c0_i32_0 : i32
    scf.if %2 {
      %cst_18 = arith.constant 0.000000e+00 : f32
      %20 = vector.broadcast %cst_18 : f32 to vector<1x64x1xf32>
      %c0_19 = arith.constant 0 : index
      %c0_20 = arith.constant 0 : index
      %c0_21 = arith.constant 0 : index
      %21 = vector.load %arg5[%c0_19, %c0_20, %c0_21] : memref<1x64x1xf32, #tpu.memory_space<vmem>>, vector<1x64x1xf32>
      tpu.vector_store %arg5[%c0_19, %c0_20, %c0_21], %20 {strides = array<i32>} : memref<1x64x1xf32, #tpu.memory_space<vmem>>, vector<1x64x1xf32>,
    } else {
    }
    %c0 = arith.constant 0 : index
    %c0_1 = arith.constant 0 : index
    %c0_2 = arith.constant 0 : index
    %c0_3 = arith.constant 0 : index
    %3 = vector.load %arg2[%c0, %c0_1, %c0_2, %c0_3] : memref<1x2x64x256xf32, #tpu.memory_space<vmem>>, vector<1x2x64x256xf32>
    %4 = vector.shape_cast %3 : vector<1x2x64x256xf32> to vector<2x64x256xf32>
    %c0_4 = arith.constant 0 : index
    %c0_5 = arith.constant 0 : index
    %c0_6 = arith.constant 0 : index
    %5 = vector.load %arg3[%c0_4, %c0_5, %c0_6] : memref<2x64x1xf32, #tpu.memory_space<vmem>>, vector<2x64x1xf32>
    %6 = vector.broadcast %5 : vector<2x64x1xf32> to vector<2x64x256xf32>
    %7 = arith.mulf %4, %6 : vector<2x64x256xf32>
    %c0_7 = arith.constant 0 : index
    %c0_8 = arith.constant 0 : index
    %c0_9 = arith.constant 0 : index
    %8 = vector.load %arg4[%c0_7, %c0_8, %c0_9] : memref<2x64x1xf32, #tpu.memory_space<vmem>>, vector<2x64x1xf32>
    %9 = vector.broadcast %8 : vector<2x64x1xf32> to vector<2x64x256xf32>
    %10 = arith.addf %7, %9 : vector<2x64x256xf32>
    %cst = arith.constant 0.000000e+00 : f32
    %11 = vector.broadcast %cst : f32 to vector<2x64x256xf32>
    %12 = arith.maximumf %10, %11 : vector<2x64x256xf32>
    %cst_10 = arith.constant dense<0.000000e+00> : vector<64x256xf32>
    %13 = vector.multi_reduction <add>, %12, %cst_10 [0] : vector<2x64x256xf32> to vector<64x256xf32>
    %c0_11 = arith.constant 0 : index
    %c0_12 = arith.constant 0 : index
    %c0_13 = arith.constant 0 : index
    %14 = vector.load %arg5[%c0_11, %c0_12, %c0_13] : memref<1x64x1xf32, #tpu.memory_space<vmem>>, vector<1x64x1xf32>
    %cst_14 = arith.constant dense<0.000000e+00> : vector<64xf32>
    %15 = vector.multi_reduction <add>, %13, %cst_14 [1] : vector<64x256xf32> to vector<64xf32>
    %16 = vector.shape_cast %15 : vector<64xf32> to vector<64x1xf32>
    %17 = vector.shape_cast %16 : vector<64x1xf32> to vector<1x64x1xf32>
    %18 = arith.addf %14, %17 : vector<1x64x1xf32>
    %c0_15 = arith.constant 0 : index
    %c0_16 = arith.constant 0 : index
    %c0_17 = arith.constant 0 : index
    %19 = vector.load %arg5[%c0_15, %c0_16, %c0_17] : memref<1x64x1xf32, #tpu.memory_space<vmem>>, vector<1x64x1xf32>
    tpu.vector_store %arg5[%c0_15, %c0_16, %c0_17], %18 {strides = array<i32>} : memref<1x64x1xf32, #tpu.memory_space<vmem>>, vector<1x64x1xf32>,
    return
  }
  func.func @transform_0(%arg0: i32, %arg1: i32) -> (i32, i32, i32, i32) {
    %c0_i32 = arith.constant 0 : i32
    %c0_i32_0 = arith.constant 0 : i32
    %c0_i32_1 = arith.constant 0 : i32
    return %arg0, %c0_i32, %c0_i32_0, %arg1 : i32, i32, i32, i32
  }
  func.func @transform_1(%arg0: i32, %arg1: i32) -> (i32, i32, i32) {
    %c0_i32 = arith.constant 0 : i32
    %c0_i32_0 = arith.constant 0 : i32
    %c0_i32_1 = arith.constant 0 : i32
    %c0_i32_2 = arith.constant 0 : i32
    return %c0_i32, %c0_i32_0, %c0_i32_1 : i32, i32, i32
  }
  func.func @transform_2(%arg0: i32, %arg1: i32) -> (i32, i32, i32) {
    %c0_i32 = arith.constant 0 : i32
    %c0_i32_0 = arith.constant 0 : i32
    %c0_i32_1 = arith.constant 0 : i32
    %c0_i32_2 = arith.constant 0 : i32
    return %c0_i32, %c0_i32_0, %c0_i32_1 : i32, i32, i32
  }
  func.func @transform_3(%arg0: i32, %arg1: i32) -> (i32, i32, i32) {
    %c0_i32 = arith.constant 0 : i32
    %c0_i32_0 = arith.constant 0 : i32
    %c0_i32_1 = arith.constant 0 : i32
    return %arg0, %c0_i32, %c0_i32_0 : i32, i32, i32
  }
}

module attributes {stable_mosaic.version = 11 : i64} {
  func.func @_skconv_apply_kernel(%arg0: i32, %arg1: i32, %arg2: memref<1x64x256xf32, #tpu.memory_space<vmem>>, %arg3: memref<1x2x64x256xf32, #tpu.memory_space<vmem>>, %arg4: memref<2x64x1xf32, #tpu.memory_space<vmem>>, %arg5: memref<2x64x1xf32, #tpu.memory_space<vmem>>, %arg6: memref<1x2x64x1xf32, #tpu.memory_space<vmem>>, %arg7: memref<1x64x256xf32, #tpu.memory_space<vmem>>) attributes {dimension_semantics = [#tpu.dimension_semantics<parallel>, #tpu.dimension_semantics<parallel>], iteration_bounds = array<i64: 2, 1>, scalar_prefetch = 0 : i64, scratch_operands = 0 : i64, tpu.core_type = #tpu.core_type<tc>, window_params = [{transform_indices = @transform_0, window_bounds = array<i64: 1, 64, 256>}, {transform_indices = @transform_1, window_bounds = array<i64: 1, 2, 64, 256>}, {pipeline_mode = #tpu.pipeline_mode<synchronous>, transform_indices = @transform_2, window_bounds = array<i64: 2, 64, 1>}, {pipeline_mode = #tpu.pipeline_mode<synchronous>, transform_indices = @transform_3, window_bounds = array<i64: 2, 64, 1>}, {transform_indices = @transform_4, window_bounds = array<i64: 1, 2, 64, 1>}, {transform_indices = @transform_5, window_bounds = array<i64: 1, 64, 256>}]} {
    %c0 = arith.constant 0 : index
    %c0_0 = arith.constant 0 : index
    %c0_1 = arith.constant 0 : index
    %c0_2 = arith.constant 0 : index
    %0 = vector.load %arg3[%c0, %c0_0, %c0_1, %c0_2] : memref<1x2x64x256xf32, #tpu.memory_space<vmem>>, vector<1x2x64x256xf32>
    %1 = vector.shape_cast %0 : vector<1x2x64x256xf32> to vector<2x64x256xf32>
    %c0_3 = arith.constant 0 : index
    %c0_4 = arith.constant 0 : index
    %c0_5 = arith.constant 0 : index
    %2 = vector.load %arg4[%c0_3, %c0_4, %c0_5] : memref<2x64x1xf32, #tpu.memory_space<vmem>>, vector<2x64x1xf32>
    %3 = vector.broadcast %2 : vector<2x64x1xf32> to vector<2x64x256xf32>
    %4 = arith.mulf %1, %3 : vector<2x64x256xf32>
    %c0_6 = arith.constant 0 : index
    %c0_7 = arith.constant 0 : index
    %c0_8 = arith.constant 0 : index
    %5 = vector.load %arg5[%c0_6, %c0_7, %c0_8] : memref<2x64x1xf32, #tpu.memory_space<vmem>>, vector<2x64x1xf32>
    %6 = vector.broadcast %5 : vector<2x64x1xf32> to vector<2x64x256xf32>
    %7 = arith.addf %4, %6 : vector<2x64x256xf32>
    %cst = arith.constant 0.000000e+00 : f32
    %8 = vector.broadcast %cst : f32 to vector<2x64x256xf32>
    %9 = arith.maximumf %7, %8 : vector<2x64x256xf32>
    %c0_9 = arith.constant 0 : index
    %c0_10 = arith.constant 0 : index
    %c0_11 = arith.constant 0 : index
    %c0_12 = arith.constant 0 : index
    %10 = vector.load %arg6[%c0_9, %c0_10, %c0_11, %c0_12] : memref<1x2x64x1xf32, #tpu.memory_space<vmem>>, vector<1x2x64x1xf32>
    %11 = vector.shape_cast %10 : vector<1x2x64x1xf32> to vector<2x64x1xf32>
    %12 = vector.broadcast %11 : vector<2x64x1xf32> to vector<2x64x256xf32>
    %13 = arith.mulf %9, %12 : vector<2x64x256xf32>
    %cst_13 = arith.constant dense<0.000000e+00> : vector<64x256xf32>
    %14 = vector.multi_reduction <add>, %13, %cst_13 [0] : vector<2x64x256xf32> to vector<64x256xf32>
    %c0_14 = arith.constant 0 : index
    %c0_15 = arith.constant 0 : index
    %c0_16 = arith.constant 0 : index
    %15 = vector.load %arg2[%c0_14, %c0_15, %c0_16] : memref<1x64x256xf32, #tpu.memory_space<vmem>>, vector<1x64x256xf32>
    %16 = vector.shape_cast %15 : vector<1x64x256xf32> to vector<64x256xf32>
    %17 = arith.addf %14, %16 : vector<64x256xf32>
    %c0_17 = arith.constant 0 : index
    %c0_18 = arith.constant 0 : index
    %c0_19 = arith.constant 0 : index
    %18 = vector.load %arg7[%c0_17, %c0_18, %c0_19] : memref<1x64x256xf32, #tpu.memory_space<vmem>>, vector<1x64x256xf32>
    %19 = vector.shape_cast %18 : vector<1x64x256xf32> to vector<64x256xf32>
    %20 = vector.shape_cast %17 : vector<64x256xf32> to vector<1x64x256xf32>
    tpu.vector_store %arg7[%c0_17, %c0_18, %c0_19], %20 {strides = array<i32>} : memref<1x64x256xf32, #tpu.memory_space<vmem>>, vector<1x64x256xf32>,
    return
  }
  func.func @transform_0(%arg0: i32, %arg1: i32) -> (i32, i32, i32) {
    %c0_i32 = arith.constant 0 : i32
    %c0_i32_0 = arith.constant 0 : i32
    return %arg0, %c0_i32, %arg1 : i32, i32, i32
  }
  func.func @transform_1(%arg0: i32, %arg1: i32) -> (i32, i32, i32, i32) {
    %c0_i32 = arith.constant 0 : i32
    %c0_i32_0 = arith.constant 0 : i32
    %c0_i32_1 = arith.constant 0 : i32
    return %arg0, %c0_i32, %c0_i32_0, %arg1 : i32, i32, i32, i32
  }
  func.func @transform_2(%arg0: i32, %arg1: i32) -> (i32, i32, i32) {
    %c0_i32 = arith.constant 0 : i32
    %c0_i32_0 = arith.constant 0 : i32
    %c0_i32_1 = arith.constant 0 : i32
    %c0_i32_2 = arith.constant 0 : i32
    return %c0_i32, %c0_i32_0, %c0_i32_1 : i32, i32, i32
  }
  func.func @transform_3(%arg0: i32, %arg1: i32) -> (i32, i32, i32) {
    %c0_i32 = arith.constant 0 : i32
    %c0_i32_0 = arith.constant 0 : i32
    %c0_i32_1 = arith.constant 0 : i32
    %c0_i32_2 = arith.constant 0 : i32
    return %c0_i32, %c0_i32_0, %c0_i32_1 : i32, i32, i32
  }
  func.func @transform_4(%arg0: i32, %arg1: i32) -> (i32, i32, i32, i32) {
    %c0_i32 = arith.constant 0 : i32
    %c0_i32_0 = arith.constant 0 : i32
    %c0_i32_1 = arith.constant 0 : i32
    %c0_i32_2 = arith.constant 0 : i32
    return %arg0, %c0_i32, %c0_i32_0, %c0_i32_1 : i32, i32, i32, i32
  }
  func.func @transform_5(%arg0: i32, %arg1: i32) -> (i32, i32, i32) {
    %c0_i32 = arith.constant 0 : i32
    %c0_i32_0 = arith.constant 0 : i32
    return %arg0, %c0_i32, %arg1 : i32, i32, i32
  }
}

</mosaic_0001>

<bundles_post_ra>
// kernel: skconv_pallas.3
= control target key start
LH: loop header
LB: loop body
LE: loop exit
PB: predicated region body
PF: predicated region fallthrough
CT: control target
= control target key end

     0   :  { %10 = vsyncpa [#allocation3], 0  ;;  %s1713_s0 = inlined_call_operand.vmem [shape: f32[2,64,256], index: 0, kind: input, shape index: {}]   ;;  %s1714_s1 = inlined_call_operand.hbm [shape: f32[2,2,64,256], index: 1, kind: input, shape index: {}]   ;;  %s1715_s2 = inlined_call_operand.vmem [shape: f32[2,64,1], index: 2, kind: input, shape index: {}]   ;;  %s1716_s3 = inlined_call_operand.vmem [shape: f32[2,64,1], index: 3, kind: input, shape index: {}]   ;;  %s1717_s4 = inlined_call_operand.vmem [shape: f32[2,2,64,1], index: 4, kind: input, shape index: {}]   ;;  %s1718_s5 = inlined_call_operand.hbm [shape: f32[2,64,256], index: 5, kind: output, shape index: {}]  }
   0x1   :  { %12 = vsyncpa [#allocation3 + $0x1], 0 }
   0x2   :  { %13 = vsyncpa [#allocation4], 0 }
   0x3   :  { %15 = vsyncpa [#allocation4 + $0x1], 0  ;;  %s1210_s18 = smov 0   ;;  %s1212_s19 = smov 0  }
   0x4   :  { %s1214_s20 = smov 0   ;;  %s1216_s21 = smov 0  }
   0x5   :  { %s1218_s22 = smov 0   ;;  %s1220_s23 = smov 0  }
   0x6 LB: > { %s968_s24 = sadd.s32 4294967295, %s1173_s23   ;;  %s969_s25 = sadd.s32 4294967294, %s1173_s23   ;;  %s1173_s23 = sphi %s1220_s23, %s21_s23   ;;  %s1169_s22 = sphi %s1218_s22, %s1730_s22   ;;  %s1165_s21 = sphi %s1216_s21, %s1729_s21   ;;  %s1161_s20 = sphi %s1214_s20, %s1728_s20   ;;  %s1157_s19 = sphi %s1212_s19, %s1727_s19   ;;  %s1153_s18 = sphi %s1210_s18, %s1726_s18  }
   0x7   : > { %s33_s26 = sadd.s32 1, %s1169_s22  ;;  %s70_s27 = sadd.s32 1, %s1161_s20 }
   0x8   : > { %p35_p0 = scmp.ge.s32.totalorder %s33_s26, 2  ;;  %p77_p1 = scmp.ne.s32.totalorder %s1161_s20, %s1157_s19 }
   0x9   : > { %p78_p2 = scmp.eq.s32.totalorder %s1173_s23, 0  ;;  %p83_p3 = scmp.ne.s32.totalorder %s1157_s19, %s1153_s18 }
   0xa   : > { %s1732_s26 = smov (%p35_p0, %s33_s26), 0  ;;  %p84_p5 = scmp.eq.s32.totalorder %s968_s24, 0 }
   0xb   : > { %p1251_p4 = por %p78_p2, %p77_p1  ;;  %s65_s29 = ssub.s32 %s1169_s22, %s1732_s26 }
   0xc   : > { %p177_p6 = scmp.eq.s32.totalorder %s968_s24, 1  ;;  %p68_p7 = scmp.eq.s32.totalorder %s65_s29, 0 }
   0xd   : > { %p1257_p8 = por %p84_p5, %p83_p3  ;;  %p183_p10 = scmp.eq.s32.totalorder %s969_s25, 1 }
   0xe   : > { %p1261_p9 = por %p177_p6, %p77_p1  ;;  %p971_p12 = scmp.ge.s32.totalorder %s1173_s23, 2 }
   0xf   : > { %s1266_s7 = scalar_select %p68_p7, %s1161_s20, %s70_s27  }
  0x10   : > { %p1268_p11 = por %p183_p10, %p83_p3  ;;  %p1003_p13 = scmp.lt.s32.totalorder %s1173_s23, 2 }
  0x11   : > { %s222_s9 = sand.u32 1, %s1161_s20   ;;  %s987_s11 = sshll.u32 %s1169_s22, 8 }
  0x12   : > { %s972_s10 = sshll.u32 %s222_s9, 8  ;;  %s233_s14 = scalar_lea.hbm %s1714_s1, %s987_s11 }
  0x13   : > { %s226_s15 = scalar_lea.vmem [#allocation2], %s972_s10  ;;  %s234_s17 = sshll.u32 %s233_s14, 4  ;;  %s235_s17 = int_to_ptr.hbm [resolvable:$true] %s234_s17 }
  0x14   : > { %s236_s16 = sshll.u32 %s226_s15, 4  ;;  %p996_p0 = pnand %p1003_p13, %p1251_p4  ;;  %s237_s16 = int_to_ptr.vmem [resolvable:$true] %s236_s16 }
  0x15   : > { %p975_p1 = scmp.ge.s32.totalorder %s1173_s23, 1  ;;  %s223_s24 = scalar_lea.sflag [#allocation3], %s222_s9 }
  0x16   : > { %s1175_s25 = smov 256   ;;  %s1176_s27 = smov 16  }
  0x17   : > { %998 = dma.hbm_to_vmem [thread:$0]  (!%p996_p0), %s235_s17, 4096, %s237_s16, %s223_s24, %s1175_s25, %s1175_s25, %s1176_s27  }
  0x18   : > { %p252_p2 = scmp.lt.s32.totalorder %s1173_s23, 3 }
  0x1a   : > { %p253_p3 = pnand %p975_p1, %p252_p2 }
  0x1c   : > { %256 = sbr.rel (%p253_p3) target bundleno = 288 (0x120), region = 40 }
  0x21   : > { %s1284_s29 = sand.u32 1, %s1157_s19  }
  0x22   : > { %s976_s10 = sshll.u32 %s1284_s29, 8  ;;  %s259_s11 = scalar_lea.sflag [#allocation3], %s1284_s29 }
  0x23   : > { %s1288_s12 = scalar_lea.vmem [#allocation2], %s976_s10 }
  0x24   : > { %1144 = dma.done.wait (%p1257_p8), %s259_s11, 4096  }
  0x25   : > { %1146 = vsyncadd (%p1257_p8), %s259_s11, 4294963200  ;;  %v1177_v0 = vmov 0   ;;  %v357_v1 = vld [vmem:[%s1715_s2 + $0x20] sm:$0xff]  ;;  %v355_v2 = vld [vmem:[%s1715_s2 + $0x10] sm:$0xff]  ;;  %p305_p4 = scmp.lt.s32.totalorder %s1165_s21, 1  ;;  %s834_s28 = scalar_lea.sflag [#allocation4], %s1284_s29 }
  0x26   : > { %1060 = vset.pattern.permute.xlu2 %v1177_v0  ;;  %1059 = vset.pattern.permute.xlu1 %v1177_v0  ;;  %v353_v3 = vld [vmem:[%s1715_s2] sm:$0xff]  ;;  %v358_v4 = vld [vmem:[%s1715_s2 + $0x28] sm:$0xff]  ;;  %v356_v5 = vld [vmem:[%s1715_s2 + $0x18] sm:$0xff]  ;;  %s1111_s30 = scalar_lea.hbm %s1718_s5, 256 }
  0x27   : > { %1058 = vset.pattern.permute.xlu0 %v1177_v0  ;;  %391 = vperm.xlu2 %1060, %v357_v1   ;;  %v354_v6 = vld [vmem:[%s1715_s2 + $0x8] sm:$0xff]  ;;  %v361_v7 = vld [vmem:[%s1715_s2 + $0x40] sm:$0xff]  ;;  %v360_v8 = vld [vmem:[%s1715_s2 + $0x38] sm:$0xff]  ;;  %s1377_s13 = scalar_select %p305_p4, %s1165_s21, 1 }
  0x28   : > { %381 = vperm.xlu1 %1059, %v355_v2   ;;  %371 = vperm.xlu0 %1058, %v353_v3   ;;  %v359_v9 = vld [vmem:[%s1715_s2 + $0x30] sm:$0xff]  ;;  %v364_v10 = vld [vmem:[%s1715_s2 + $0x58] sm:$0xff]  ;;  %v362_v12 = vld [vmem:[%s1715_s2 + $0x48] sm:$0xff] }
  0x29   : > { %v363_v11 = vld [vmem:[%s1715_s2 + $0x50] sm:$0xff]  ;;  %v366_v14 = vld [vmem:[%s1715_s2 + $0x68] sm:$0xff]  ;;  %v365_v15 = vld [vmem:[%s1715_s2 + $0x60] sm:$0xff]  ;;  %s988_s25 = sshll.u32 %s1377_s13, 7  ;;  %s977_s13 = sshll.u32 %s1284_s29, 7 }
  0x2a   : > { %v367_v13 = vld [vmem:[%s1715_s2 + $0x70] sm:$0xff]  ;;  %v482_v16 = vld [vmem:[%s1716_s3 + $0x8] sm:$0xff]  ;;  %v481_v17 = vld [vmem:[%s1716_s3] sm:$0xff]  ;;  %s1394_s11 = scalar_lea.vmem %s1717_s4, %s988_s25  ;;  %s1521_s17 = scalar_lea.vmem %s1713_s0, %s988_s25 }
  0x2b   : > { %v368_v18 = vld [vmem:[%s1715_s2 + $0x78] sm:$0xff]  ;;  %v485_v19 = vld [vmem:[%s1716_s3 + $0x20] sm:$0xff]  ;;  %v483_v21 = vld [vmem:[%s1716_s3 + $0x10] sm:$0xff]  ;;  %s1576_s24 = scalar_lea.vmem [#allocation5], %s977_s13 }
  0x2c   : > { %v484_v20 = vld [vmem:[%s1716_s3 + $0x18] sm:$0xff]  ;;  %v487_v23 = vld [vmem:[%s1716_s3 + $0x30] sm:$0xff]  ;;  %v486_v24 = vld [vmem:[%s1716_s3 + $0x28] sm:$0xff]  ;;  %s848_s10 = sshll.u32 %s1576_s24, 4  ;;  %s849_s10 = int_to_ptr.vmem [resolvable:$true] %s848_s10 }
  0x2d   : > { %v488_v22 = vld [vmem:[%s1716_s3 + $0x38] sm:$0xff]  ;;  %v491_v25 = vld [vmem:[%s1716_s3 + $0x50] sm:$0xff]  ;;  %v490_v26 = vld [vmem:[%s1716_s3 + $0x48] sm:$0xff] }
  0x2e   : > { %v489_v27 = vld [vmem:[%s1716_s3 + $0x40] sm:$0xff]  ;;  %v494_v28 = vld [vmem:[%s1716_s3 + $0x68] sm:$0xff]  ;;  %v492_v30 = vld [vmem:[%s1716_s3 + $0x58] sm:$0xff] }
  0x2f   : > { %396 = vperm.xlu2 %1060, %v358_v4   ;;  %v493_v29 = vld [vmem:[%s1716_s3 + $0x60] sm:$0xff]  ;;  %v496_v32 = vld [vmem:[%s1716_s3 + $0x78] sm:$0xff]  ;;  %v495_v33 = vld [vmem:[%s1716_s3 + $0x70] sm:$0xff] }
  0x30   : > { %386 = vperm.xlu1 %1059, %v356_v5   ;;  %376 = vperm.xlu0 %1058, %v354_v6   ;;  %v641_v31 = vld [vmem:[%s1394_s11] sm:$0xff]  ;;  %v644_v34 = vld [vmem:[%s1394_s11 + $0x18] sm:$0xff]  ;;  %v643_v35 = vld [vmem:[%s1394_s11 + $0x10] sm:$0xff] }
  0x31   : > { %v642_v36 = vld [vmem:[%s1394_s11 + $0x8] sm:$0xff]  ;;  %v647_v38 = vld [vmem:[%s1394_s11 + $0x30] sm:$0xff]  ;;  %v645_v40 = vld [vmem:[%s1394_s11 + $0x20] sm:$0xff] }
  0x32   : > { %v646_v39 = vld [vmem:[%s1394_s11 + $0x28] sm:$0xff]  ;;  %v649_v43 = vld [vmem:[%s1394_s11 + $0x40] sm:$0xff]  ;;  %v648_v44 = vld [vmem:[%s1394_s11 + $0x38] sm:$0xff] }
  0x33   : > { %v650_v42 = vld [vmem:[%s1394_s11 + $0x48] sm:$0xff]  ;;  %v653_v46 = vld [vmem:[%s1394_s11 + $0x60] sm:$0xff]  ;;  %v652_v47 = vld [vmem:[%s1394_s11 + $0x58] sm:$0xff] }
  0x34   : > { %v651_v48 = vld [vmem:[%s1394_s11 + $0x50] sm:$0xff]  ;;  %v656_v52 = vld [vmem:[%s1394_s11 + $0x78] sm:$0xff]  ;;  %v654_v54 = vld [vmem:[%s1394_s11 + $0x68] sm:$0xff] }
  0x35   : > { %v655_v53 = vld [vmem:[%s1394_s11 + $0x70] sm:$0xff] }
  0x37   : > { %411 = vperm.xlu2 %1060, %v361_v7  }
  0x38   : > { %406 = vperm.xlu1 %1059, %v360_v8   ;;  %401 = vperm.xlu0 %1058, %v359_v9  }
  0x3f   : > { %426 = vperm.xlu2 %1060, %v364_v10  }
  0x40   : > { %421 = vperm.xlu1 %1059, %v363_v11   ;;  %416 = vperm.xlu0 %1058, %v362_v12  }
  0x47   : > { %441 = vperm.xlu2 %1060, %v367_v13  }
  0x48   : > { %436 = vperm.xlu1 %1059, %v366_v14   ;;  %431 = vperm.xlu0 %1058, %v365_v15  }
  0x4f   : > { %504 = vperm.xlu2 %1060, %v482_v16  }
  0x50   : > { %499 = vperm.xlu1 %1059, %v481_v17   ;;  %446 = vperm.xlu0 %1058, %v368_v18   ;;  %v323_v18 = vld [vmem:[%s1288_s12 + $0x10] sm:$0xff] }
  0x57   : > { %519 = vperm.xlu2 %1060, %v485_v19   ;;  %v324_v19 = vld [vmem:[%s1288_s12 + $0x18] sm:$0xff] }
  0x58   : > { %514 = vperm.xlu1 %1059, %v484_v20   ;;  %509 = vperm.xlu0 %1058, %v483_v21   ;;  %v339_v20 = vld [vmem:[%s1288_s12 + $0x90] sm:$0xff]  ;;  %v340_v21 = vld [vmem:[%s1288_s12 + $0x98] sm:$0xff] }
  0x5f   : > { %534 = vperm.xlu2 %1060, %v488_v22  }
  0x60   : > { %529 = vperm.xlu1 %1059, %v487_v23   ;;  %524 = vperm.xlu0 %1058, %v486_v24   ;;  %v329_v24 = vld [vmem:[%s1288_s12 + $0x40] sm:$0xff] }
  0x67   : > { %549 = vperm.xlu2 %1060, %v491_v25   ;;  %v330_v25 = vld [vmem:[%s1288_s12 + $0x48] sm:$0xff] }
  0x68   : > { %544 = vperm.xlu1 %1059, %v490_v26   ;;  %539 = vperm.xlu0 %1058, %v489_v27  }
  0x6f   : > { %564 = vperm.xlu2 %1060, %v494_v28  }
  0x70   : > { %559 = vperm.xlu1 %1059, %v493_v29   ;;  %554 = vperm.xlu0 %1058, %v492_v30   ;;  %v331_v30 = vld [vmem:[%s1288_s12 + $0x50] sm:$0xff] }
  0x77   : > { %659 = vperm.xlu2 %1060, %v641_v31   ;;  %v332_v31 = vld [vmem:[%s1288_s12 + $0x58] sm:$0xff] }
  0x78   : > { %574 = vperm.xlu1 %1059, %v496_v32   ;;  %569 = vperm.xlu0 %1058, %v495_v33   ;;  %v337_v32 = vld [vmem:[%s1288_s12 + $0x80] sm:$0xff] }
  0x7f   : > { %674 = vperm.xlu2 %1060, %v644_v34   ;;  %v338_v34 = vld [vmem:[%s1288_s12 + $0x88] sm:$0xff] }
  0x80   : > { %669 = vperm.xlu1 %1059, %v643_v35   ;;  %664 = vperm.xlu0 %1058, %v642_v36   ;;  %v343_v35 = vld [vmem:[%s1288_s12 + $0xb0] sm:$0xff]  ;;  %v344_v36 = vld [vmem:[%s1288_s12 + $0xb8] sm:$0xff] }
  0x81   : > { %v1406_v37 = vpop.permute.xlu2 %391 }
  0x87   : > { %689 = vperm.xlu2 %1060, %v647_v38  }
  0x88   : > { %684 = vperm.xlu1 %1059, %v646_v39   ;;  %679 = vperm.xlu0 %1058, %v645_v40  }
  0x89   : > { %v1411_v41 = vpop.permute.xlu2 %396 }
  0x8f   : > { %704 = vperm.xlu2 %1060, %v650_v42  }
  0x90   : > { %699 = vperm.xlu1 %1059, %v649_v43   ;;  %694 = vperm.xlu0 %1058, %v648_v44   ;;  %v325_v43 = vld [vmem:[%s1288_s12 + $0x20] sm:$0xff]  ;;  %v457_v44 = vmul.f32 %v1406_v37, %v329_v24 }
  0x91   : > { %v1416_v45 = vpop.permute.xlu2 %411 }
  0x97   : > { %719 = vperm.xlu2 %1060, %v653_v46   ;;  %v458_v46 = vmul.f32 %v1406_v37, %v330_v25  ;;  %v349_v25 = vld [vmem:[%s1288_s12 + $0xe0] sm:$0xff] }
  0x98   : > { %714 = vperm.xlu1 %1059, %v652_v47   ;;  %709 = vperm.xlu0 %1058, %v651_v48   ;;  %v1496_v47 = vmul.f32 %v1411_v41, %v331_v30  ;;  %v1499_v48 = vmul.f32 %v1411_v41, %v332_v31  ;;  %v321_v41 = vld [vmem:[%s1288_s12] sm:$0xff]  ;;  %v328_v31 = vld [vmem:[%s1288_s12 + $0x38] sm:$0xff] }
  0x99   : > { %v1421_v49 = vpop.permute.xlu2 %426 }
  0x9a   : > { %v1423_v50 = vpop.permute.xlu1 %381  ;;  %v1425_v51 = vpop.permute.xlu0 %371  ;;  %v1511_v37 = vmul.f32 %v1421_v49, %v343_v35 }
  0x9f   : > { %734 = vperm.xlu2 %1060, %v656_v52   ;;  %v326_v52 = vld [vmem:[%s1288_s12 + $0x28] sm:$0xff] }
  0xa0   : > { %729 = vperm.xlu1 %1059, %v655_v53   ;;  %724 = vperm.xlu0 %1058, %v654_v54   ;;  %v345_v53 = vld [vmem:[%s1288_s12 + $0xc0] sm:$0xff]  ;;  %v346_v54 = vld [vmem:[%s1288_s12 + $0xc8] sm:$0xff]  ;;  %v1531_v24 = vmul.f32 %v1423_v50, %v326_v52  ;;  %v787_v52 = vld [vmem:[%s1521_s17 + $0x10] sm:$0xff] }
  0xa1   : > { %v1430_v55 = vpop.permute.xlu2 %441 }
  0xa2   : > { %v1432_v56 = vpop.permute.xlu1 %386  ;;  %v377_v57 = vpop.permute.xlu0 %376 }
  0xa3   : > { %v451_v26 = vmul.f32 %v377_v57, %v323_v18  ;;  %v452_v27 = vmul.f32 %v377_v57, %v324_v19  ;;  %v1505_v57 = vmul.f32 %v1416_v45, %v337_v32  ;;  %v335_v32 = vld [vmem:[%s1288_s12 + $0x70] sm:$0xff] }
  0xa9   : > { %v505_v58 = vpop.permute.xlu2 %504 }
  0xaa   : > { %v1434_v59 = vpop.permute.xlu1 %406  ;;  %v1436_v60 = vpop.permute.xlu0 %401  ;;  %v579_v38 = vadd.f32 %v505_v58, %v451_v26  ;;  %v580_v39 = vadd.f32 %v505_v58, %v452_v27  ;;  %v1508_v58 = vmul.f32 %v1416_v45, %v338_v34  ;;  %v350_v26 = vld [vmem:[%s1288_s12 + $0xe8] sm:$0xff]  ;;  %v327_v27 = vld [vmem:[%s1288_s12 + $0x30] sm:$0xff]  ;;  %v336_v34 = vld [vmem:[%s1288_s12 + $0x78] sm:$0xff] }
  0xac   : > { %v611_v18 = vmax.f32 %v579_v38, 0.0  ;;  %v612_v45 = vmax.f32 %v580_v39, 0.0  ;;  %v449_v39 = vmul.f32 %v1425_v51, %v321_v41 }
  0xb1   : > { %v1438_v61 = vpop.permute.xlu2 %519 }
  0xb2   : > { %v1440_v62 = vpop.permute.xlu1 %421  ;;  %v417_v63 = vpop.permute.xlu0 %416 }
  0xb3   : > { %v467_v28 = vmul.f32 %v417_v63, %v339_v20  ;;  %v468_v29 = vmul.f32 %v417_v63, %v340_v21  ;;  %v1514_v63 = vmul.f32 %v1421_v49, %v344_v36  ;;  %v1528_v49 = vmul.f32 %v1423_v50, %v325_v43 }
  0xb4   : > { %v586_v43 = vadd.f32 %v1438_v61, %v458_v46  ;;  %v456_v46 = vmul.f32 %v1432_v56, %v328_v31 }
  0xb6   : > { %v618_v31 = vmax.f32 %v586_v43, 0.0 }
  0xb9   : > { %v1442_v0 = vpop.permute.xlu2 %534 }
  0xba   : > { %v1444_v1 = vpop.permute.xlu1 %436  ;;  %v1446_v2 = vpop.permute.xlu0 %431 }
  0xc1   : > { %v1448_v3 = vpop.permute.xlu2 %549 }
  0xc2   : > { %v1450_v4 = vpop.permute.xlu1 %499  ;;  %v1452_v5 = vpop.permute.xlu0 %446 }
  0xc9   : > { %v1454_v6 = vpop.permute.xlu2 %564 }
  0xca   : > { %v1456_v7 = vpop.permute.xlu1 %514  ;;  %v1458_v8 = vpop.permute.xlu0 %509 }
  0xd1   : > { %v1460_v9 = vpop.permute.xlu2 %659 }
  0xd2   : > { %v1462_v10 = vpop.permute.xlu1 %529  ;;  %v1464_v11 = vpop.permute.xlu0 %524 }
  0xd9   : > { %v1466_v12 = vpop.permute.xlu2 %674 }
  0xda   : > { %v545_v13 = vpop.permute.xlu1 %544  ;;  %v1468_v14 = vpop.permute.xlu0 %539 }
  0xdb   : > { %v595_v40 = vadd.f32 %v545_v13, %v467_v28  ;;  %v596_v42 = vadd.f32 %v545_v13, %v468_v29  ;;  %v322_v13 = vld [vmem:[%s1288_s12 + $0x8] sm:$0xff]  ;;  %v473_v28 = vmul.f32 %v1446_v2, %v345_v53  ;;  %v474_v29 = vmul.f32 %v1446_v2, %v346_v54  ;;  %v788_v53 = vld [vmem:[%s1521_s17 + $0x18] sm:$0xff] }
  0xdc   : > { %v585_v2 = vadd.f32 %v1438_v61, %v457_v44  ;;  %v334_v54 = vld [vmem:[%s1288_s12 + $0x68] sm:$0xff]  ;;  %v1558_v44 = vmul.f32 %v1430_v55, %v350_v26  ;;  %v455_v61 = vmul.f32 %v1432_v56, %v327_v27 }
  0xdd   : > { %v627_v19 = vmax.f32 %v595_v40, 0.0  ;;  %v628_v20 = vmax.f32 %v596_v42, 0.0  ;;  %v450_v40 = vmul.f32 %v1425_v51, %v322_v13  ;;  %v333_v42 = vld [vmem:[%s1288_s12 + $0x60] sm:$0xff]  ;;  %v1555_v51 = vmul.f32 %v1430_v55, %v349_v25 }
  0xde   : > { %v1567_v25 = vmul.f32 %v1436_v60, %v333_v42  ;;  %v1570_v55 = vmul.f32 %v1436_v60, %v334_v54  ;;  %v617_v27 = vmax.f32 %v585_v2, 0.0  ;;  %v348_v42 = vld [vmem:[%s1288_s12 + $0xd8] sm:$0xff]  ;;  %v577_v54 = vadd.f32 %v1450_v4, %v449_v39 }
  0xe1   : > { %v1472_v16 = vpop.permute.xlu2 %689 }
  0xe2   : > { %v1470_v15 = vpop.permute.xlu1 %559  ;;  %1724 = vst [vmem:[#allocation8_spill] sm:$0xff] %v1472_v16  ;;  %v1474_v17 = vpop.permute.xlu0 %554  ;;  %v341_v16 = vld [vmem:[%s1288_s12 + $0xa0] sm:$0xff] }
  0xe3   : > { %v469_v26 = vmul.f32 %v1440_v62, %v341_v16 }
  0xe9   : > { %v705_v33 = vpop.permute.xlu2 %704 }
  0xea   : > { %v1480_v22 = vpop.permute.xlu1 %574  ;;  %v1482_v23 = vpop.permute.xlu0 %569  ;;  %v755_v35 = vmul.f32 %v705_v33, %v627_v19  ;;  %v756_v50 = vmul.f32 %v705_v33, %v628_v20  ;;  %v342_v19 = vld [vmem:[%s1288_s12 + $0xa8] sm:$0xff]  ;;  %v601_v33 = vadd.f32 %v1470_v15, %v473_v28  ;;  %v463_v20 = vmul.f32 %v1434_v59, %v335_v32 }
  0xeb   : > { %v464_v28 = vmul.f32 %v1434_v59, %v336_v34  ;;  %v470_v56 = vmul.f32 %v1440_v62, %v342_v19  ;;  %v578_v19 = vadd.f32 %v1450_v4, %v450_v40  ;;  %v476_v4 = vmul.f32 %v1444_v1, %v348_v42 }
  0xec   : > { %v633_v32 = vmax.f32 %v601_v33, 0.0  ;;  %v591_v60 = vadd.f32 %v1442_v0, %v463_v20  ;;  %v594_v33 = vadd.f32 %v1468_v14, %v1508_v58 }
  0xed   : > { %v592_v16 = vadd.f32 %v1442_v0, %v464_v28  ;;  %v593_v0 = vadd.f32 %v1468_v14, %v1505_v57  ;;  %v1601_v57 = vadd.f32 %v1448_v3, %v469_v26  ;;  %v1604_v14 = vadd.f32 %v1448_v3, %v470_v56 }
  0xee   : > { %v623_v28 = vmax.f32 %v591_v60, 0.0 }
  0xf1   : > { %v720_v13 = vpop.permute.xlu2 %719 }
  0xf2   : > { %v1525_v21 = vpop.permute.xlu1 %669  ;;  %v665_v30 = vpop.permute.xlu0 %664  ;;  %v761_v2 = vmul.f32 %v720_v13, %v633_v32 }
  0xf3   : > { %v739_v36 = vmul.f32 %v665_v30, %v611_v18  ;;  %v740_v38 = vmul.f32 %v665_v30, %v612_v45  ;;  %v602_v18 = vadd.f32 %v1470_v15, %v474_v29  ;;  %v351_v30 = vld [vmem:[%s1288_s12 + $0xf0] sm:$0xff]  ;;  %v352_v15 = vld [vmem:[%s1288_s12 + $0xf8] sm:$0xff] }
  0xf4   : > { %v479_v62 = vmul.f32 %v1452_v5, %v351_v30  ;;  %v624_v30 = vmax.f32 %v592_v16, 0.0 }
  0xf5   : > { %v771_v45 = vadd.f32 %v755_v35, %v739_v36  ;;  %v772_v41 = vadd.f32 %v756_v50, %v740_v38  ;;  %v634_v59 = vmax.f32 %v602_v18, 0.0  ;;  %v480_v50 = vmul.f32 %v1452_v5, %v352_v15  ;;  %v347_v38 = vld [vmem:[%s1288_s12 + $0xd0] sm:$0xff]  ;;  %v793_v18 = vld [vmem:[%s1521_s17 + $0x40] sm:$0xff]  ;;  %v794_v5 = vld [vmem:[%s1521_s17 + $0x48] sm:$0xff]  ;;  %s990_s12 = sshll.u32 %s1165_s21, 7 }
  0xf6   : > { %v475_v39 = vmul.f32 %v1444_v1, %v347_v38  ;;  %v609_v15 = vmax.f32 %v577_v54, 0.0  ;;  %v584_v1 = vadd.f32 %v1456_v7, %v456_v46  ;;  %v785_v38 = vld [vmem:[%s1521_s17] sm:$0xff]  ;;  %v599_v46 = vadd.f32 %v1474_v17, %v1511_v37  ;;  %s847_s27 = scalar_lea.hbm %s1718_s5, %s990_s12 }
  0xf7   : > { %v803_v29 = vadd.f32 %v787_v52, %v771_v45  ;;  %v804_v35 = vadd.f32 %v788_v53, %v772_v41  ;;  %v762_v43 = vmul.f32 %v720_v13, %v634_v59  ;;  %v607_v45 = vadd.f32 %v1480_v22, %v479_v62  ;;  %s850_s11 = sshll.u32 %s847_s27, 4  ;;  %s851_s11 = int_to_ptr.hbm [resolvable:$true] %s850_s11 }
  0xf8   : > { %v608_v41 = vadd.f32 %v1480_v22, %v480_v50  ;;  %v610_v22 = vmax.f32 %v578_v19, 0.0  ;;  %v737_v3 = vmul.f32 %v1460_v9, %v609_v15  ;;  %v581_v54 = vadd.f32 %v1458_v8, %v1528_v49  ;;  %s1105_s9 = sshra.s32 %s851_s11, 4  ;;  %s1106_s9 = int_to_ptr.hbm [resolvable:$true] %s1105_s9 }
  0xf9   : > { %819 = vst [vmem:[%s1576_s24 + $0x10] sm:$0xff] %v803_v29  ;;  %v625_v29 = vmax.f32 %v593_v0, 0.0  ;;  %v639_v32 = vmax.f32 %v607_v45, 0.0  ;;  %v582_v19 = vadd.f32 %v1458_v8, %v1531_v24  ;;  %v630_v37 = vmax.f32 %v1604_v14, 0.0  ;;  %s1107_s14 = scalar_lea.hbm %s1106_s9, 128  ;;  %p1112_p8 = scmp.lt.s32.totalorder %s1106_s9, %s1718_s5 }
  0xfa   : > { %v1579_v34 = vpop.permute.xlu1 %684  ;;  %820 = vst [vmem:[%s1576_s24 + $0x18] sm:$0xff] %v804_v35  ;;  %v680_v36 = vpop.permute.xlu0 %679  ;;  %v626_v35 = vmax.f32 %v594_v33, 0.0  ;;  %v640_v26 = vmax.f32 %v608_v41, 0.0  ;;  %v738_v56 = vmul.f32 %v1460_v9, %v610_v22  ;;  %v799_v9 = vld [vmem:[%s1521_s17 + $0x70] sm:$0xff]  ;;  %v1630_v45 = vadd.f32 %v1454_v6, %v476_v4  ;;  %p1108_p5 = scmp.ne.s32.totalorder %s1106_s9, %s1107_s14  ;;  %p1113_p10 = scmp.lt.s32.totalorder %s1111_s30, %s1107_s14 }
  0xfb   : > { %v745_v52 = vmul.f32 %v680_v36, %v617_v27  ;;  %v746_v53 = vmul.f32 %v680_v36, %v618_v31  ;;  %v735_v27 = vpop.permute.xlu2 %734  ;;  %v583_v31 = vadd.f32 %v1456_v7, %v455_v61  ;;  %v786_v61 = vld [vmem:[%s1521_s17 + $0x8] sm:$0xff]  ;;  %v616_v8 = vmax.f32 %v584_v1, 0.0 }
  0xfc   : > { %v767_v50 = vmul.f32 %v735_v27, %v639_v32  ;;  %v768_v36 = vmul.f32 %v735_v27, %v640_v26  ;;  %v631_v24 = vmax.f32 %v599_v46, 0.0  ;;  %v605_v27 = vadd.f32 %v1482_v23, %v1555_v51  ;;  %v789_v32 = vld [vmem:[%s1521_s17 + $0x20] sm:$0xff]  ;;  %v790_v26 = vld [vmem:[%s1521_s17 + $0x28] sm:$0xff]  ;;  %p1109_p6 = pnand %p1108_p5, %p1261_p9  ;;  %p1114_p13 = por %p1113_p10, %p1112_p8 }
  0xfd   : > { %v777_v20 = vadd.f32 %v761_v2, %v745_v52  ;;  %v778_v13 = vadd.f32 %v762_v43, %v746_v53  ;;  %v600_v2 = vadd.f32 %v1474_v17, %v1514_v63  ;;  %v800_v53 = vld [vmem:[%s1521_s17 + $0x78] sm:$0xff]  ;;  %v1627_v63 = vadd.f32 %v1454_v6, %v475_v39 }
  0xfe   : > { %v589_v39 = vadd.f32 %v1462_v10, %v1567_v25  ;;  %v590_v6 = vadd.f32 %v1462_v10, %v1570_v55  ;;  %v744_v14 = vmul.f32 %v1466_v12, %v616_v8  ;;  %v791_v25 = vld [vmem:[%s1521_s17 + $0x30] sm:$0xff]  ;;  %p1110_p7 = pneg %p1109_p6 }
  0xff   : > { %v809_v58 = vadd.f32 %v793_v18, %v777_v20  ;;  %v810_v40 = vadd.f32 %v794_v5, %v778_v13  ;;  %v629_v18 = vmax.f32 %v1601_v57, 0.0  ;;  %v615_v20 = vmax.f32 %v583_v31, 0.0 }
 0x100   : > { %v632_v13 = vmax.f32 %v600_v2, 0.0  ;;  %p1115_p0 = pnand %p1114_p13, %p1110_p7 }
 0x101   : > { %825 = vst [vmem:[%s1576_s24 + $0x40] sm:$0xff] %v809_v58  ;;  %v743_v57 = vmul.f32 %v1466_v12, %v615_v20  ;;  %v606_v12 = vadd.f32 %v1482_v23, %v1558_v44  ;;  %v621_v23 = vmax.f32 %v589_v39, 0.0  ;;  %v622_v44 = vmax.f32 %v590_v6, 0.0 }
 0x102   : > { %v700_v59 = vpop.permute.xlu1 %699  ;;  %826 = vst [vmem:[%s1576_s24 + $0x48] sm:$0xff] %v810_v40  ;;  %v695_v62 = vpop.permute.xlu0 %694 }
 0x103   : > { %v753_v60 = vmul.f32 %v700_v59, %v625_v29  ;;  %v754_v16 = vmul.f32 %v700_v59, %v626_v35  ;;  %v751_v42 = vmul.f32 %v695_v62, %v623_v28  ;;  %v752_v7 = vmul.f32 %v695_v62, %v624_v30  ;;  %v792_v35 = vld [vmem:[%s1521_s17 + $0x38] sm:$0xff] }
 0x104   : > { %v613_v28 = vmax.f32 %v581_v54, 0.0  ;;  %v614_v30 = vmax.f32 %v582_v19, 0.0  ;;  %v588_v59 = vadd.f32 %v1464_v11, %v1499_v48  ;;  %v797_v54 = vld [vmem:[%s1521_s17 + $0x60] sm:$0xff]  ;;  %v798_v19 = vld [vmem:[%s1521_s17 + $0x68] sm:$0xff] }
 0x105   : > { %v769_v43 = vadd.f32 %v753_v60, %v737_v3  ;;  %v770_v52 = vadd.f32 %v754_v16, %v738_v56  ;;  %v783_v0 = vadd.f32 %v767_v50, %v751_v42  ;;  %v784_v33 = vadd.f32 %v768_v36, %v752_v7  ;;  %v1725_v42 = vld [vmem:[#allocation8_spill] sm:$0xff] }
 0x106   : > { %v741_v22 = vmul.f32 %v1525_v21, %v613_v28  ;;  %v742_v29 = vmul.f32 %v1525_v21, %v614_v30  ;;  %v587_v21 = vadd.f32 %v1464_v11, %v1496_v47  ;;  %v637_v50 = vmax.f32 %v605_v27, 0.0 }
 0x107   : > { %v801_v5 = vadd.f32 %v785_v38, %v769_v43  ;;  %v802_v17 = vadd.f32 %v786_v61, %v770_v52  ;;  %v815_v49 = vadd.f32 %v799_v9, %v783_v0  ;;  %v816_v41 = vadd.f32 %v800_v53, %v784_v33 }
 0x108   : > { %v638_v36 = vmax.f32 %v606_v12, 0.0  ;;  %v635_v47 = vmax.f32 %v1627_v63, 0.0  ;;  %v636_v11 = vmax.f32 %v1630_v45, 0.0  ;;  %v619_v48 = vmax.f32 %v587_v21, 0.0 }
 0x109   : > { %817 = vst [vmem:[%s1576_s24] sm:$0xff] %v801_v5  ;;  %v620_v38 = vmax.f32 %v588_v59, 0.0  ;;  %v749_v7 = vmul.f32 %v1725_v42, %v621_v23  ;;  %v750_v46 = vmul.f32 %v1725_v42, %v622_v44  ;;  %v795_v5 = vld [vmem:[%s1521_s17 + $0x50] sm:$0xff] }
 0x10a   : > { %818 = vst [vmem:[%s1576_s24 + $0x8] sm:$0xff] %v802_v17  ;;  %v715_v4 = vpop.permute.xlu1 %714  ;;  %v710_v15 = vpop.permute.xlu0 %709  ;;  %v747_v9 = vmul.f32 %v1579_v34, %v619_v48  ;;  %v796_v17 = vld [vmem:[%s1521_s17 + $0x58] sm:$0xff] }
 0x10b   : > { %831 = vst [vmem:[%s1576_s24 + $0x70] sm:$0xff] %v815_v49  ;;  %v759_v58 = vmul.f32 %v715_v4, %v631_v24  ;;  %v760_v40 = vmul.f32 %v715_v4, %v632_v13  ;;  %v757_v10 = vmul.f32 %v710_v15, %v629_v18  ;;  %v758_v55 = vmul.f32 %v710_v15, %v630_v37 }
 0x10c   : > { %832 = vst [vmem:[%s1576_s24 + $0x78] sm:$0xff] %v816_v41  ;;  %v748_v53 = vmul.f32 %v1579_v34, %v620_v38 }
 0x10d   : > { %v775_v31 = vadd.f32 %v759_v58, %v743_v57  ;;  %v776_v1 = vadd.f32 %v760_v40, %v744_v14  ;;  %v773_v3 = vadd.f32 %v757_v10, %v741_v22  ;;  %v774_v56 = vadd.f32 %v758_v55, %v742_v29 }
 0x10f   : > { %v807_v60 = vadd.f32 %v791_v25, %v775_v31  ;;  %v808_v16 = vadd.f32 %v792_v35, %v776_v1  ;;  %v805_v51 = vadd.f32 %v789_v32, %v773_v3  ;;  %v806_v62 = vadd.f32 %v790_v26, %v774_v56 }
 0x111   : > { %823 = vst [vmem:[%s1576_s24 + $0x30] sm:$0xff] %v807_v60 }
 0x112   : > { %824 = vst [vmem:[%s1576_s24 + $0x38] sm:$0xff] %v808_v16  ;;  %v730_v61 = vpop.permute.xlu1 %729  ;;  %v725_v52 = vpop.permute.xlu0 %724 }
 0x113   : > { %821 = vst [vmem:[%s1576_s24 + $0x20] sm:$0xff] %v805_v51  ;;  %v765_v2 = vmul.f32 %v730_v61, %v637_v50  ;;  %v766_v43 = vmul.f32 %v730_v61, %v638_v36  ;;  %v763_v0 = vmul.f32 %v725_v52, %v635_v47  ;;  %v764_v33 = vmul.f32 %v725_v52, %v636_v11 }
 0x114   : > { %822 = vst [vmem:[%s1576_s24 + $0x28] sm:$0xff] %v806_v62 }
 0x115   : > { %v781_v18 = vadd.f32 %v765_v2, %v749_v7  ;;  %v782_v37 = vadd.f32 %v766_v43, %v750_v46  ;;  %v779_v63 = vadd.f32 %v763_v0, %v747_v9  ;;  %v780_v45 = vadd.f32 %v764_v33, %v748_v53 }
 0x117   : > { %v813_v34 = vadd.f32 %v797_v54, %v781_v18  ;;  %v814_v49 = vadd.f32 %v798_v19, %v782_v37  ;;  %v811_v41 = vadd.f32 %v795_v5, %v779_v63  ;;  %v812_v20 = vadd.f32 %v796_v17, %v780_v45 }
 0x119   : > { %829 = vst [vmem:[%s1576_s24 + $0x60] sm:$0xff] %v813_v34 }
 0x11a   : > { %830 = vst [vmem:[%s1576_s24 + $0x68] sm:$0xff] %v814_v49 }
 0x11b   : > { %827 = vst [vmem:[%s1576_s24 + $0x50] sm:$0xff] %v811_v41 }
 0x11c   : > { %828 = vst [vmem:[%s1576_s24 + $0x58] sm:$0xff] %v812_v20 }
 0x11d   : > { %1118 = shalt.err (!%p1115_p0)
}
 0x11e   : > { %s1178_s29 = smov 256   ;;  %s1179_s24 = smov 16  }
 0x11f   : > { %993 = dma.vmem_to_hbm [thread:$0]  (%p1261_p9), %s849_s10, 2048, %s851_s11, %s834_s28, %s1178_s29, %s1178_s29, %s1179_s24  }
 0x120 PF: > { %s865_s12 = sand.u32 1, %s1153_s18   ;;  %p1000_p1 = pnand %p971_p12, %p1268_p11 }
 0x121   : > { %s866_s21 = scalar_lea.sflag [#allocation4], %s865_s12 }
 0x122   : > { %p1001_p2 = pneg %p1000_p1 }
 0x124   : > { %1148 = dma.done.wait (%p1001_p2), %s866_s21, 2048  }
 0x125   : > { %1150 = vsyncadd (%p1001_p2), %s866_s21, 4294965248  ;;  %s21_s23 = sadd.s32 1, %s1173_s23   ;;  %s1726_s18 = smov %s1157_s19 }
 0x126   : > { %p18_p3 = scmp.ge.s32.totalorder %s21_s23, 4   ;;  %s1727_s19 = smov %s1161_s20 }
 0x127   : > { %s1728_s20 = smov %s1266_s7  ;;  %s1729_s21 = smov %s1169_s22 }
 0x128   : > { %s1730_s22 = smov %s1732_s26  ;;  %20 = sbr.rel (!%p18_p3) target bundleno = 6 (0x6), region = 91 }
 0x12d   :  { %872 = vsyncpa [#allocation3], 1 }
 0x12e   :  { %874 = vsyncpa [#allocation3 + $0x1], 1 }
 0x12f   :  { %875 = vsyncpa [#allocation4], 1 }
 0x130   :  { %877 = vsyncpa [#allocation4 + $0x1], 1 }

// kernel: skconv_pallas.2
= control target key start
LH: loop header
LB: loop body
LE: loop exit
PB: predicated region body
PF: predicated region fallthrough
CT: control target
= control target key end

     0   :  { %8 = vsyncpa [#allocation3], 0  ;;  %s1202_s0 = inlined_call_operand.hbm [shape: f32[2,2,64,256], index: 0, kind: input, shape index: {}]   ;;  %s1203_s1 = inlined_call_operand.vmem [shape: f32[2,64,1], index: 1, kind: input, shape index: {}]   ;;  %s1204_s2 = inlined_call_operand.vmem [shape: f32[2,64,1], index: 2, kind: input, shape index: {}]   ;;  %s1205_s3 = inlined_call_operand.vmem [shape: f32[2,64,1], index: 3, kind: output, shape index: {}]  }
   0x1   :  { %10 = vsyncpa [#allocation3 + $0x1], 0  ;;  %s869_s12 = smov 0   ;;  %s871_s13 = smov 0  }
   0x2   :  { %s873_s14 = smov 0   ;;  %s875_s15 = smov 0  }
   0x3   :  { %s877_s16 = smov 0   ;;  %s879_s17 = smov 0  }
   0x4 LB: > { %s686_s18 = sadd.s32 4294967295, %s843_s17   ;;  %s28_s19 = sadd.s32 1, %s839_s16  ;;  %s843_s17 = sphi %s879_s17, %s16_s17   ;;  %s839_s16 = sphi %s877_s16, %s1212_s16   ;;  %s835_s15 = sphi %s875_s15, %s1211_s15   ;;  %s831_s14 = sphi %s873_s14, %s1210_s14   ;;  %s827_s13 = sphi %s871_s13, %s1209_s13   ;;  %s823_s12 = sphi %s869_s12, %s1208_s12  }
   0x5   : > { %p30_p0 = scmp.ge.s32.totalorder %s28_s19, 2  ;;  %s37_s20 = sadd.s32 1, %s831_s14 }
   0x6   : > { %p44_p1 = scmp.ne.s32.totalorder %s831_s14, %s827_s13  ;;  %p45_p2 = scmp.eq.s32.totalorder %s843_s17, 0 }
   0x7   : > { %s1214_s19 = smov (%p30_p0, %s28_s19), 0  ;;  %p50_p4 = scmp.ne.s32.totalorder %s827_s13, %s823_s12 }
   0x8   : > { %p905_p3 = por %p45_p2, %p44_p1  ;;  %s32_s22 = ssub.s32 %s839_s16, %s1214_s19 }
   0x9   : > { %p51_p5 = scmp.eq.s32.totalorder %s686_s18, 0  ;;  %p35_p6 = scmp.eq.s32.totalorder %s32_s22, 0 }
   0xa   : > { %p707_p8 = scmp.lt.s32.totalorder %s843_s17, 2  ;;  %s148_s25 = sand.u32 1, %s831_s14  }
   0xb   : > { %p912_p7 = por %p51_p5, %p50_p4  ;;  %s699_s26 = sshll.u32 %s839_s16, 8 }
   0xc   : > { %s918_s24 = scalar_select %p35_p6, %s831_s14, %s37_s20  }
   0xd   : > { %s690_s27 = sshll.u32 %s148_s25, 8  ;;  %s159_s30 = scalar_lea.hbm %s1202_s0, %s699_s26 }
   0xe   : > { %s160_s4 = sshll.u32 %s159_s30, 4  ;;  %s152_s5 = scalar_lea.vmem [#allocation2], %s690_s27  ;;  %s161_s4 = int_to_ptr.hbm [resolvable:$true] %s160_s4 }
   0xf   : > { %s162_s6 = sshll.u32 %s152_s5, 4  ;;  %p704_p9 = pnand %p707_p8, %p905_p3  ;;  %s163_s6 = int_to_ptr.vmem [resolvable:$true] %s162_s6 }
  0x10   : > { %p693_p10 = scmp.ge.s32.totalorder %s843_s17, 1  ;;  %p170_p11 = scmp.lt.s32.totalorder %s843_s17, 3 }
  0x11   : > { %s149_s7 = scalar_lea.sflag [#allocation3], %s148_s25  ;;  %s845_s8 = smov 256  }
  0x12   : > { %s846_s9 = smov 16   ;;  %p171_p12 = pnand %p693_p10, %p170_p11 }
  0x13   : > { %706 = dma.hbm_to_vmem [thread:$0]  (!%p704_p9), %s161_s4, 4096, %s163_s6, %s149_s7, %s845_s8, %s845_s8, %s846_s9  }
  0x14   : > { %174 = sbr.rel (%p171_p12) target bundleno = 359 (0x167), region = 32  ;;  %s176_s10 = sand.u32 (!%p171_p12), 1, %s827_s13  }
  0x15   : > { %s694_s11 = sshll.u32 (!%p171_p12), %s176_s10, 8  ;;  %s177_s12 = scalar_lea.sflag (!%p171_p12), [#allocation3], %s176_s10 }
  0x16   : > { %s930_s18 = scalar_lea.vmem (!%p171_p12), [#allocation2], %s694_s11 }
  0x19   : > { %818 = dma.done.wait (%p912_p7), %s177_s12, 4096  }
  0x1a   : > { %820 = vsyncadd (%p912_p7), %s177_s12, 4294963200  ;;  %v847_v0 = vmov 0   ;;  %v259_v1 = vld [vmem:[%s1203_s1 + $0x20] sm:$0xff]  ;;  %v257_v2 = vld [vmem:[%s1203_s1 + $0x10] sm:$0xff]  ;;  %p205_p13 = scmp.lt.s32.totalorder %s835_s15, 1  ;;  %vm214_vm0 = vcmask 7168  }
  0x1b   : > { %762 = vset.pattern.permute.xlu2 %v847_v0  ;;  %761 = vset.pattern.permute.xlu1 %v847_v0  ;;  %v255_v3 = vld [vmem:[%s1203_s1] sm:$0xff]  ;;  %v260_v4 = vld [vmem:[%s1203_s1 + $0x28] sm:$0xff]  ;;  %v258_v5 = vld [vmem:[%s1203_s1 + $0x18] sm:$0xff] }
  0x1c   : > { %760 = vset.pattern.permute.xlu0 %v847_v0  ;;  %293 = vperm.xlu2 %762, %v259_v1   ;;  %v256_v6 = vld [vmem:[%s1203_s1 + $0x8] sm:$0xff]  ;;  %v263_v7 = vld [vmem:[%s1203_s1 + $0x40] sm:$0xff]  ;;  %v262_v8 = vld [vmem:[%s1203_s1 + $0x38] sm:$0xff]  ;;  %s1216_s15 = smov (!%p205_p13, %s835_s15), 1 }
  0x1d   : > { %283 = vperm.xlu1 %761, %v257_v2   ;;  %273 = vperm.xlu0 %760, %v255_v3   ;;  %v261_v9 = vld [vmem:[%s1203_s1 + $0x30] sm:$0xff]  ;;  %v266_v10 = vld [vmem:[%s1203_s1 + $0x58] sm:$0xff]  ;;  %v264_v12 = vld [vmem:[%s1203_s1 + $0x48] sm:$0xff]  ;;  %s700_s28 = sshll.u32 %s1216_s15, 6 }
  0x1e   : > { %v265_v11 = vld [vmem:[%s1203_s1 + $0x50] sm:$0xff]  ;;  %v268_v14 = vld [vmem:[%s1203_s1 + $0x68] sm:$0xff]  ;;  %v267_v15 = vld [vmem:[%s1203_s1 + $0x60] sm:$0xff]  ;;  %s1102_s30 = scalar_lea.vmem %s1205_s3, %s700_s28 }
  0x1f   : > { %v269_v13 = vld [vmem:[%s1203_s1 + $0x70] sm:$0xff]  ;;  %v384_v16 = vld [vmem:[%s1204_s2 + $0x8] sm:$0xff]  ;;  %v383_v17 = vld [vmem:[%s1204_s2] sm:$0xff] }
  0x20   : > { %v270_v18 = vld [vmem:[%s1203_s1 + $0x78] sm:$0xff]  ;;  %v387_v19 = vld [vmem:[%s1204_s2 + $0x20] sm:$0xff]  ;;  %v385_v21 = vld [vmem:[%s1204_s2 + $0x10] sm:$0xff] }
  0x21   : > { %v386_v20 = vld [vmem:[%s1204_s2 + $0x18] sm:$0xff]  ;;  %v389_v23 = vld [vmem:[%s1204_s2 + $0x30] sm:$0xff]  ;;  %v388_v24 = vld [vmem:[%s1204_s2 + $0x28] sm:$0xff] }
  0x22   : > { %v390_v22 = vld [vmem:[%s1204_s2 + $0x38] sm:$0xff]  ;;  %v393_v25 = vld [vmem:[%s1204_s2 + $0x50] sm:$0xff]  ;;  %v392_v26 = vld [vmem:[%s1204_s2 + $0x48] sm:$0xff] }
  0x23   : > { %v391_v27 = vld [vmem:[%s1204_s2 + $0x40] sm:$0xff]  ;;  %v396_v28 = vld [vmem:[%s1204_s2 + $0x68] sm:$0xff]  ;;  %v394_v30 = vld [vmem:[%s1204_s2 + $0x58] sm:$0xff] }
  0x24   : > { %298 = vperm.xlu2 %762, %v260_v4   ;;  %v395_v29 = vld [vmem:[%s1204_s2 + $0x60] sm:$0xff]  ;;  %v398_v31 = vld [vmem:[%s1204_s2 + $0x78] sm:$0xff]  ;;  %v397_v32 = vld [vmem:[%s1204_s2 + $0x70] sm:$0xff] }
  0x25   : > { %288 = vperm.xlu1 %761, %v258_v5   ;;  %278 = vperm.xlu0 %760, %v256_v6   ;;  %v243_v53 = vld [vmem:[%s930_s18 + $0xa0] sm:$0xff]  ;;  %v244_v54 = vld [vmem:[%s930_s18 + $0xa8] sm:$0xff] }
  0x26   : > { %v227_v55 = vld [vmem:[%s930_s18 + $0x20] sm:$0xff]  ;;  %v228_v56 = vld [vmem:[%s930_s18 + $0x28] sm:$0xff] }
  0x2c   : > { %313 = vperm.xlu2 %762, %v263_v7  }
  0x2d   : > { %308 = vperm.xlu1 %761, %v262_v8   ;;  %303 = vperm.xlu0 %760, %v261_v9  }
  0x34   : > { %328 = vperm.xlu2 %762, %v266_v10   ;;  %v225_v10 = vld [vmem:[%s930_s18 + $0x10] sm:$0xff] }
  0x35   : > { %323 = vperm.xlu1 %761, %v265_v11   ;;  %318 = vperm.xlu0 %760, %v264_v12   ;;  %v226_v11 = vld [vmem:[%s930_s18 + $0x18] sm:$0xff] }
  0x3c   : > { %343 = vperm.xlu2 %762, %v269_v13  }
  0x3d   : > { %338 = vperm.xlu1 %761, %v268_v14   ;;  %333 = vperm.xlu0 %760, %v267_v15   ;;  %v231_v14 = vld [vmem:[%s930_s18 + $0x40] sm:$0xff] }
  0x44   : > { %406 = vperm.xlu2 %762, %v384_v16   ;;  %v232_v16 = vld [vmem:[%s930_s18 + $0x48] sm:$0xff] }
  0x45   : > { %401 = vperm.xlu1 %761, %v383_v17   ;;  %348 = vperm.xlu0 %760, %v270_v18   ;;  %v233_v17 = vld [vmem:[%s930_s18 + $0x50] sm:$0xff]  ;;  %v234_v18 = vld [vmem:[%s930_s18 + $0x58] sm:$0xff] }
  0x4c   : > { %421 = vperm.xlu2 %762, %v387_v19  }
  0x4d   : > { %416 = vperm.xlu1 %761, %v386_v20   ;;  %411 = vperm.xlu0 %760, %v385_v21   ;;  %v239_v21 = vld [vmem:[%s930_s18 + $0x80] sm:$0xff] }
  0x54   : > { %436 = vperm.xlu2 %762, %v390_v22   ;;  %v223_v22 = vld [vmem:[%s930_s18] sm:$0xff] }
  0x55   : > { %431 = vperm.xlu1 %761, %v389_v23   ;;  %426 = vperm.xlu0 %760, %v388_v24   ;;  %v224_v23 = vld [vmem:[%s930_s18 + $0x8] sm:$0xff] }
  0x56   : > { %v240_v24 = vld [vmem:[%s930_s18 + $0x88] sm:$0xff] }
  0x5c   : > { %451 = vperm.xlu2 %762, %v393_v25  }
  0x5d   : > { %446 = vperm.xlu1 %761, %v392_v26   ;;  %441 = vperm.xlu0 %760, %v391_v27   ;;  %v241_v27 = vld [vmem:[%s930_s18 + $0x90] sm:$0xff] }
  0x64   : > { %466 = vperm.xlu2 %762, %v396_v28   ;;  %v242_v28 = vld [vmem:[%s930_s18 + $0x98] sm:$0xff] }
  0x65   : > { %461 = vperm.xlu1 %761, %v395_v29   ;;  %456 = vperm.xlu0 %760, %v394_v30  }
  0x6d   : > { %476 = vperm.xlu1 %761, %v398_v31   ;;  %471 = vperm.xlu0 %760, %v397_v32  }
  0x76   : > { %v1032_v33 = vpop.permute.xlu2 %293 }
  0x77   : > { %v1085_v29 = vmul.f32 %v1032_v33, %v231_v14  ;;  %v1088_v30 = vmul.f32 %v1032_v33, %v232_v16 }
  0x7e   : > { %v1034_v34 = vpop.permute.xlu2 %298 }
  0x7f   : > { %v361_v31 = vmul.f32 %v1034_v34, %v233_v17  ;;  %v362_v32 = vmul.f32 %v1034_v34, %v234_v18 }
  0x86   : > { %v1036_v35 = vpop.permute.xlu2 %313 }
  0x8e   : > { %v1038_v36 = vpop.permute.xlu2 %328 }
  0x8f   : > { %v284_v37 = vpop.permute.xlu1 %283  ;;  %v1040_v38 = vpop.permute.xlu0 %273 }
  0x90   : > { %v355_v60 = vmul.f32 %v284_v37, %v227_v55  ;;  %v356_v61 = vmul.f32 %v284_v37, %v228_v56  ;;  %v351_v37 = vmul.f32 %v1040_v38, %v223_v22 }
  0x96   : > { %v1042_v39 = vpop.permute.xlu2 %343 }
  0x97   : > { %v1044_v40 = vpop.permute.xlu1 %288  ;;  %v279_v41 = vpop.permute.xlu0 %278 }
  0x98   : > { %v353_v19 = vmul.f32 %v279_v41, %v225_v10  ;;  %v354_v20 = vmul.f32 %v279_v41, %v226_v11  ;;  %v352_v41 = vmul.f32 %v1040_v38, %v224_v23 }
  0x9e   : > { %v407_v42 = vpop.permute.xlu2 %406 }
  0x9f   : > { %v1046_v43 = vpop.permute.xlu1 %308  ;;  %v1048_v44 = vpop.permute.xlu0 %303  ;;  %v481_v25 = vadd.f32 %v407_v42, %v353_v19  ;;  %v482_v26 = vadd.f32 %v407_v42, %v354_v20  ;;  %v367_v42 = vmul.f32 %v1036_v35, %v239_v21  ;;  %v247_v20 = vld [vmem:[%s930_s18 + $0xc0] sm:$0xff]  ;;  %v248_v21 = vld [vmem:[%s930_s18 + $0xc8] sm:$0xff] }
  0xa1   : > { %v513_v33 = vmax.f32 %v481_v25, 0.0  ;;  %v235_v25 = vld [vmem:[%s930_s18 + $0x60] sm:$0xff] }
  0xa6   : > { %v1050_v46 = vpop.permute.xlu2 %421 }
  0xa7   : > { %v324_v45 = vpop.permute.xlu1 %323  ;;  %v319_v47 = vpop.permute.xlu0 %318 }
  0xa8   : > { %v371_v58 = vmul.f32 %v324_v45, %v243_v53  ;;  %v372_v59 = vmul.f32 %v324_v45, %v244_v54  ;;  %v249_v45 = vld [vmem:[%s930_s18 + $0xd0] sm:$0xff]  ;;  %v250_v53 = vld [vmem:[%s930_s18 + $0xd8] sm:$0xff]  ;;  %v368_v54 = vmul.f32 %v1036_v35, %v240_v24  ;;  %v369_v55 = vmul.f32 %v319_v47, %v241_v27 }
  0xa9   : > { %v370_v56 = vmul.f32 %v319_v47, %v242_v28 }
  0xae   : > { %v1056_v50 = vpop.permute.xlu2 %436 }
  0xaf   : > { %v1052_v48 = vpop.permute.xlu1 %338  ;;  %v1054_v49 = vpop.permute.xlu0 %333 }
  0xb0   : > { %v377_v34 = vmul.f32 %v1052_v48, %v249_v45  ;;  %v378_v38 = vmul.f32 %v1052_v48, %v250_v53  ;;  %v245_v48 = vld [vmem:[%s930_s18 + $0xb0] sm:$0xff]  ;;  %v375_v45 = vmul.f32 %v1054_v49, %v247_v20  ;;  %v376_v53 = vmul.f32 %v1054_v49, %v248_v21 }
  0xb1   : > { %v373_v24 = vmul.f32 %v1038_v36, %v245_v48 }
  0xb6   : > { %v452_v57 = vpop.permute.xlu2 %451 }
  0xb7   : > { %v402_v51 = vpop.permute.xlu1 %401  ;;  %v1058_v52 = vpop.permute.xlu0 %348  ;;  %v499_v62 = vadd.f32 %v452_v57, %v371_v58  ;;  %v500_v63 = vadd.f32 %v452_v57, %v372_v59  ;;  %v514_v57 = vmax.f32 %v482_v26, 0.0 }
  0xb8   : > { %v479_v58 = vadd.f32 %v402_v51, %v351_v37  ;;  %v480_v59 = vadd.f32 %v402_v51, %v352_v41  ;;  %v229_v51 = vld [vmem:[%s930_s18 + $0x30] sm:$0xff] }
  0xb9   : > { %v531_v4 = vmax.f32 %v499_v62, 0.0  ;;  %v532_v5 = vmax.f32 %v500_v63, 0.0  ;;  %v357_v18 = vmul.f32 %v1044_v40, %v229_v51  ;;  %v237_v51 = vld [vmem:[%s930_s18 + $0x70] sm:$0xff] }
  0xbe   : > { %v467_v62 = vpop.permute.xlu2 %466 }
  0xbf   : > { %v1064_v0 = vpop.permute.xlu1 %416  ;;  %v412_v1 = vpop.permute.xlu0 %411  ;;  %v505_v14 = vadd.f32 %v467_v62, %v377_v34 }
  0xc0   : > { %v483_v2 = vadd.f32 %v412_v1, %v355_v60  ;;  %v484_v3 = vadd.f32 %v412_v1, %v356_v61 }
  0xc2   : > { %v515_v6 = vmax.f32 %v483_v2, 0.0  ;;  %v516_v7 = vmax.f32 %v484_v3, 0.0  ;;  %v230_v2 = vld [vmem:[%s930_s18 + $0x38] sm:$0xff] }
  0xc3   : > { %v358_v19 = vmul.f32 %v1044_v40, %v230_v2  ;;  %v485_v40 = vadd.f32 %v1064_v0, %v357_v18  ;;  %v238_v2 = vld [vmem:[%s930_s18 + $0x78] sm:$0xff] }
  0xc4   : > { %v547_v8 = vadd.f32 %v531_v4, %v515_v6  ;;  %v548_v9 = vadd.f32 %v532_v5, %v516_v7  ;;  %v848_v7 = vmov 0.0  }
  0xc5   : > { %217 = vst.msk [vmem:[%s1102_s30 + $0x10] sm:$0xff] %vm214_vm0, %v848_v7 }
  0xc6   : > { %v573_v13 = vadd.f32 %v548_v9, %v547_v8  ;;  %v511_v8 = vmax.f32 %v479_v58, 0.0  ;;  %v512_v9 = vmax.f32 %v480_v59, 0.0  ;;  %215 = vst.msk [vmem:[%s1102_s30] sm:$0xff] %vm214_vm0, %v848_v7 }
  0xc7   : > { %v1069_v12 = vpop.permute.xlu1 %431  ;;  %v427_v15 = vpop.permute.xlu0 %426  ;;  %216 = vst.msk [vmem:[%s1102_s30 + $0x8] sm:$0xff] %vm214_vm0, %v848_v7 }
  0xc8   : > { %574 = vadd.xlane.f32.xlu1 %v573_v13  ;;  %v489_v3 = vadd.f32 %v427_v15, %v361_v31  ;;  %v490_v4 = vadd.f32 %v427_v15, %v362_v32  ;;  %v246_v13 = vld [vmem:[%s930_s18 + $0xb8] sm:$0xff]  ;;  %v506_v15 = vadd.f32 %v467_v62, %v378_v38  ;;  %218 = vst.msk [vmem:[%s1102_s30 + $0x18] sm:$0xff] %vm214_vm0, %v848_v7 }
  0xc9   : > { %219 = vst.msk [vmem:[%s1102_s30 + $0x20] sm:$0xff] %vm214_vm0, %v848_v7  ;;  %v374_v31 = vmul.f32 %v1038_v36, %v246_v13  ;;  %v486_v32 = vadd.f32 %v1064_v0, %v358_v19  ;;  %v236_v36 = vld [vmem:[%s930_s18 + $0x68] sm:$0xff]  ;;  %v363_v0 = vmul.f32 %v1048_v44, %v235_v25 }
  0xca   : > { %v521_v26 = vmax.f32 %v489_v3, 0.0  ;;  %v522_v27 = vmax.f32 %v490_v4, 0.0  ;;  %220 = vst.msk [vmem:[%s1102_s30 + $0x28] sm:$0xff] %vm214_vm0, %v848_v7  ;;  %v364_v62 = vmul.f32 %v1048_v44, %v236_v36 }
  0xcb   : > { %221 = vst.msk [vmem:[%s1102_s30 + $0x30] sm:$0xff] %vm214_vm0, %v848_v7  ;;  %v518_v34 = vmax.f32 %v486_v32, 0.0  ;;  %v491_v3 = vadd.f32 %v1069_v12, %v363_v0 }
  0xcc   : > { %222 = vst.msk [vmem:[%s1102_s30 + $0x38] sm:$0xff] %vm214_vm0, %v848_v7  ;;  %v254_v7 = vld [vmem:[%s930_s18 + $0xf8] sm:$0xff]  ;;  %v492_v48 = vadd.f32 %v1069_v12, %v364_v62 }
  0xcd   : > { %v382_v12 = vmul.f32 %v1058_v52, %v254_v7  ;;  %v523_v20 = vmax.f32 %v491_v3, 0.0 }
  0xce   : > { %v524_v21 = vmax.f32 %v492_v48, 0.0  ;;  %v560_v0 = vld [vmem:[%s1102_s30 + $0x8] sm:$0xff] }
  0xcf   : > { %v447_v60 = vpop.permute.xlu1 %446  ;;  %v442_v61 = vpop.permute.xlu0 %441 }
  0xd0   : > { %v497_v35 = vadd.f32 %v447_v60, %v369_v55  ;;  %v498_v47 = vadd.f32 %v447_v60, %v370_v56  ;;  %v495_v63 = vadd.f32 %v442_v61, %v367_v42  ;;  %v496_v1 = vadd.f32 %v442_v61, %v368_v54  ;;  %v252_v61 = vld [vmem:[%s930_s18 + $0xe8] sm:$0xff]  ;;  %v563_v62 = vld [vmem:[%s1102_s30 + $0x20] sm:$0xff] }
  0xd1   : > { %v537_v42 = vmax.f32 %v505_v14, 0.0  ;;  %v538_v54 = vmax.f32 %v506_v15, 0.0  ;;  %v517_v60 = vmax.f32 %v485_v40, 0.0 }
  0xd2   : > { %v529_v5 = vmax.f32 %v497_v35, 0.0  ;;  %v530_v6 = vmax.f32 %v498_v47, 0.0  ;;  %v527_v10 = vmax.f32 %v495_v63, 0.0  ;;  %v528_v11 = vmax.f32 %v496_v1, 0.0  ;;  %v251_v47 = vld [vmem:[%s930_s18 + $0xe0] sm:$0xff] }
  0xd3   : > { %v553_v58 = vadd.f32 %v537_v42, %v521_v26  ;;  %v554_v59 = vadd.f32 %v538_v54, %v522_v27  ;;  %v487_v63 = vadd.f32 %v1050_v46, %v1085_v29  ;;  %v488_v1 = vadd.f32 %v1050_v46, %v1088_v30  ;;  %v561_v54 = vld [vmem:[%s1102_s30 + $0x10] sm:$0xff]  ;;  %v566_v3 = vld [vmem:[%s1102_s30 + $0x38] sm:$0xff] }
  0xd4   : > { %v545_v16 = vadd.f32 %v529_v5, %v513_v33  ;;  %v546_v17 = vadd.f32 %v530_v6, %v514_v57  ;;  %v543_v22 = vadd.f32 %v527_v10, %v511_v8  ;;  %v544_v23 = vadd.f32 %v528_v11, %v512_v9  ;;  %v253_v6 = vld [vmem:[%s930_s18 + $0xf0] sm:$0xff] }
  0xd5   : > { %v582_v10 = vadd.f32 %v554_v59, %v553_v58  ;;  %v379_v44 = vmul.f32 %v1042_v39, %v251_v47  ;;  %v380_v29 = vmul.f32 %v1042_v39, %v252_v61  ;;  %v365_v46 = vmul.f32 %v1046_v43, %v237_v51  ;;  %v564_v59 = vld [vmem:[%s1102_s30 + $0x28] sm:$0xff]  ;;  %v565_v61 = vld [vmem:[%s1102_s30 + $0x30] sm:$0xff] }
  0xd6   : > { %v570_v28 = vadd.f32 %v546_v17, %v545_v16  ;;  %v567_v41 = vadd.f32 %v544_v23, %v543_v22  ;;  %v366_v30 = vmul.f32 %v1046_v43, %v238_v2  ;;  %v519_v13 = vmax.f32 %v487_v63, 0.0 }
  0xd7   : > { %v462_v37 = vpop.permute.xlu1 %461  ;;  %v457_v55 = vpop.permute.xlu0 %456  ;;  %v520_v14 = vmax.f32 %v488_v1, 0.0  ;;  %v381_v17 = vmul.f32 %v1058_v52, %v253_v6  ;;  %v493_v26 = vadd.f32 %v1056_v50, %v365_v46 }
  0xd8   : > { %571 = vadd.xlane.f32.xlu0 %v570_v28  ;;  %v501_v56 = vadd.f32 %v457_v55, %v373_v24  ;;  %v502_v33 = vadd.f32 %v457_v55, %v374_v31  ;;  %568 = vadd.xlane.f32.xlu2 %v567_v41  ;;  %v503_v57 = vadd.f32 %v462_v37, %v375_v45 }
  0xd9   : > { %v504_v49 = vadd.f32 %v462_v37, %v376_v53  ;;  %v494_v27 = vadd.f32 %v1056_v50, %v366_v30  ;;  %v525_v41 = vmax.f32 %v493_v26, 0.0 }
  0xda   : > { %v533_v38 = vmax.f32 %v501_v56, 0.0  ;;  %v534_v35 = vmax.f32 %v502_v33, 0.0  ;;  %v535_v8 = vmax.f32 %v503_v57, 0.0  ;;  %v559_v56 = vld [vmem:[%s1102_s30] sm:$0xff] }
  0xdb   : > { %v536_v9 = vmax.f32 %v504_v49, 0.0  ;;  %v526_v45 = vmax.f32 %v494_v27, 0.0 }
  0xdc   : > { %v549_v4 = vadd.f32 %v533_v38, %v517_v60  ;;  %v550_v5 = vadd.f32 %v534_v35, %v518_v34  ;;  %v551_v39 = vadd.f32 %v535_v8, %v519_v13  ;;  %v562_v60 = vld [vmem:[%s1102_s30 + $0x18] sm:$0xff] }
  0xdd   : > { %v552_v22 = vadd.f32 %v536_v9, %v520_v14 }
  0xde   : > { %v576_v11 = vadd.f32 %v550_v5, %v549_v4 }
  0xdf   : > { %v477_v15 = vpop.permute.xlu1 %476  ;;  %v472_v16 = vpop.permute.xlu0 %471  ;;  %v579_v37 = vadd.f32 %v552_v22, %v551_v39 }
  0xe0   : > { %583 = vadd.xlane.f32.xlu0 %v582_v10  ;;  %v507_v18 = vadd.f32 %v472_v16, %v379_v44  ;;  %v508_v19 = vadd.f32 %v472_v16, %v380_v29  ;;  %577 = vadd.xlane.f32.xlu2 %v576_v11  ;;  %v509_v23 = vadd.f32 %v477_v15, %v381_v17 }
  0xe1   : > { %v510_v24 = vadd.f32 %v477_v15, %v382_v12 }
  0xe2   : > { %v539_v25 = vmax.f32 %v507_v18, 0.0  ;;  %v540_v43 = vmax.f32 %v508_v19, 0.0  ;;  %v541_v52 = vmax.f32 %v509_v23, 0.0 }
  0xe3   : > { %v542_v40 = vmax.f32 %v510_v24, 0.0 }
  0xe4   : > { %v555_v28 = vadd.f32 %v539_v25, %v523_v20  ;;  %v556_v31 = vadd.f32 %v540_v43, %v524_v21  ;;  %v557_v53 = vadd.f32 %v541_v52, %v525_v41 }
  0xe5   : > { %v558_v42 = vadd.f32 %v542_v40, %v526_v45 }
  0xe6   : > { %v585_v32 = vadd.f32 %v556_v31, %v555_v28 }
  0xe7   : > { %v588_v50 = vadd.f32 %v558_v42, %v557_v53 }
  0xe8   : > { %586 = vadd.xlane.f32.xlu1 %v585_v32  ;;  %580 = vadd.xlane.f32.xlu2 %v579_v37 }
  0xf0   : > { %589 = vadd.xlane.f32.xlu2 %v588_v50 }
 0x13b   : > { %v575_v55 = vpop.xlane.xlu1 %574 }
 0x13c   : > { %v593_v36 = vadd.f32 %v575_v55, %v561_v54 }
 0x13e   : > { %602 = vst.msk [vmem:[%s1102_s30 + $0x10] sm:$0xff] %vm214_vm0, %v593_v36 }
 0x14b   : > { %v572_v33 = vpop.xlane.xlu0 %571  ;;  %v569_v49 = vpop.xlane.xlu2 %568 }
 0x14c   : > { %v592_v57 = vadd.f32 %v572_v33, %v560_v0  ;;  %v591_v58 = vadd.f32 %v569_v49, %v559_v56 }
 0x14e   : > { %601 = vst.msk [vmem:[%s1102_s30 + $0x8] sm:$0xff] %vm214_vm0, %v592_v57 }
 0x14f   : > { %600 = vst.msk [vmem:[%s1102_s30] sm:$0xff] %vm214_vm0, %v591_v58 }
 0x153   : > { %v584_v34 = vpop.xlane.xlu0 %583  ;;  %v578_v35 = vpop.xlane.xlu2 %577 }
 0x154   : > { %v596_v38 = vadd.f32 %v584_v34, %v564_v59  ;;  %v594_v47 = vadd.f32 %v578_v35, %v562_v60 }
 0x156   : > { %605 = vst.msk [vmem:[%s1102_s30 + $0x28] sm:$0xff] %vm214_vm0, %v596_v38 }
 0x157   : > { %603 = vst.msk [vmem:[%s1102_s30 + $0x18] sm:$0xff] %vm214_vm0, %v594_v47 }
 0x15b   : > { %v587_v63 = vpop.xlane.xlu1 %586  ;;  %v581_v1 = vpop.xlane.xlu2 %580 }
 0x15c   : > { %v597_v51 = vadd.f32 %v587_v63, %v565_v61  ;;  %v595_v2 = vadd.f32 %v581_v1, %v563_v62 }
 0x15e   : > { %606 = vst.msk [vmem:[%s1102_s30 + $0x30] sm:$0xff] %vm214_vm0, %v597_v51 }
 0x15f   : > { %604 = vst.msk [vmem:[%s1102_s30 + $0x20] sm:$0xff] %vm214_vm0, %v595_v2 }
 0x163   : > { %v590_v4 = vpop.xlane.xlu2 %589 }
 0x164   : > { %v598_v5 = vadd.f32 %v590_v4, %v566_v3 }
 0x166   : > { %607 = vst.msk [vmem:[%s1102_s30 + $0x38] sm:$0xff] %vm214_vm0, %v598_v5 }
 0x167 PF: > { %s16_s17 = sadd.s32 1, %s843_s17   ;;  %s1208_s12 = smov %s827_s13 }
 0x168   : > { %p13_p0 = scmp.ge.s32.totalorder %s16_s17, 4   ;;  %s1209_s13 = smov %s831_s14 }
 0x169   : > { %s1210_s14 = smov %s918_s24  ;;  %s1211_s15 = smov %s839_s16 }
 0x16a   : > { %s1212_s16 = smov %s1214_s19  ;;  %15 = sbr.rel (!%p13_p0) target bundleno = 4 (0x4), region = 76 }
 0x16f   :  { %629 = vsyncpa [#allocation3], 1 }
 0x170   :  { %631 = vsyncpa [#allocation3 + $0x1], 1 }

</bundles_post_ra>
